<compile_context>
chip_gen: v7x
topology: tpu7x:2x2x1
jax: 0.10.0
libtpu: 0.0.40
codegen_flags: <defaults>
</compile_context>

<pallas_src>
import functools

import jax
import jax.numpy as jnp
from jax.experimental import pallas as pl
from jax.experimental.pallas import tpu as pltpu


# ------------------------------ fused kernel --------------------------------


def _dense_layer_kernel(x_ref, wa_ref, ba_ref, wb_ref, bb_ref, wc_ref, bc_ref,
                        o_ref, *, w):
    """Fused _DenseLayer forward for one batch image.

    Layouts (per grid step, everything channels-major / lane-dense on H*W):
      x_ref : (1, Cin,  H*W)     input
      o_ref : (1, Ctot, H*W)     fused [x | branch1 | branch2]
      wa    : (2*inter, Cin)     merged 1x1 weights (branch1a|branch2a), BN folded
      wb    : (9, 2*g, 2*inter)  per-tap block-diagonal 3x3 weights (b1b|b2b)
      wc    : (9, g, g)          per-tap 3x3 weights (branch2c)
      b*    : (Cout, 1)          folded BN biases (broadcast along lanes)
    """
    cin = x_ref.shape[1]
    hw = x_ref.shape[2]
    g = wc_ref.shape[1]
    cdt = wa_ref.dtype                                 # MXU compute dtype

    x_cs = x_ref[0]                                    # (Cin, H*W) lane-dense
    # Passthrough rows of the fused concat: torch.cat([x, ...], dim=1).
    o_ref[0, :cin, :] = x_cs.astype(o_ref.dtype)

    # Lane-position masks for the horizontal (dx != 0) conv taps.
    col = jax.lax.broadcasted_iota(jnp.int32, (1, hw), 1) % w
    keep_l = col != 0                                  # valid when dx == -1
    keep_r = col != (w - 1)                            # valid when dx == +1

    def shift(v, t):
        # out[:, p] = v[:, p + t], zero-filled outside [0, hw).  Static t.
        if t == 0:
            return v
        c = v.shape[0]
        z = jnp.zeros((c, abs(t)), v.dtype)
        if t > 0:
            return jnp.concatenate([v[:, t:], z], axis=-1)
        return jnp.concatenate([z, v[:, :t]], axis=-1)

    def conv3x3(act, w_taps_ref, b_ref):
        # act: (Cin, H*W) f32; w_taps_ref[t]: (Cout, Cin).  9 tap GEMMs
        # accumulated in f32 (no im2col matrix, no padded scratch).
        acc = None
        for dy in (-1, 0, 1):
            for dx in (-1, 0, 1):
                s = shift(act, dy * w + dx)
                if dx == -1:
                    s = jnp.where(keep_l, s, 0.0)
                elif dx == 1:
                    s = jnp.where(keep_r, s, 0.0)
                t = (dy + 1) * 3 + (dx + 1)
                part = jnp.dot(w_taps_ref[t], s.astype(cdt),
                               preferred_element_type=jnp.float32)
                acc = part if acc is None else acc + part
        return jnp.maximum(acc + b_ref[...], 0.0)      # (Cout, H*W) f32

    # ---- branch1a + branch2a: one merged 1x1 GEMM (+ folded BN, ReLU) ------
    a = jnp.dot(wa_ref[...], x_cs.astype(cdt),
                preferred_element_type=jnp.float32)
    a = jnp.maximum(a + ba_ref[...], 0.0)              # (2*inter, H*W) f32

    # ---- branch1b + branch2b: one block-diagonal 3x3 conv ------------------
    b = conv3x3(a, wb_ref, bb_ref)                     # (2*g, H*W) f32
    o_ref[0, cin:cin + g, :] = b[:g].astype(o_ref.dtype)     # branch1 output

    # ---- branch2c: 3x3 conv on the branch2b half ----------------------------
    c = conv3x3(b[g:], wc_ref, bc_ref)                 # (g, H*W) f32
    o_ref[0, cin + g:, :] = c.astype(o_ref.dtype)             # branch2 output


# -------------------------- parameter fusion / glue --------------------------


def _fuse_dense_layer_params(params, compute_dtype):
    """Fold BN into conv weights and build the (transposed) fused operands."""
    w1a, s1a, b1a = params["branch1a"]     # (Cin, inter), (inter,), (inter,)
    w2a, s2a, b2a = params["branch2a"]
    w1b, s1b, b1b = params["branch1b"]     # (3, 3, inter, g)  HWIO
    w2b, s2b, b2b = params["branch2b"]
    w2c, s2c, b2c = params["branch2c"]     # (3, 3, g, g)

    # Merged 1x1 (branch1a | branch2a); BN scale folded; transposed so the
    # kernel computes W @ X with H*W on the lane axis.
    waT = jnp.concatenate([w1a * s1a, w2a * s2a], axis=1).T   # (2*inter, Cin)
    ba = jnp.concatenate([b1a, b2a]).reshape(-1, 1)           # (2*inter, 1)

    # Per-tap block-diagonal 3x3 weights: branch1b & branch2b share the same
    # 9 shifted operands built from the merged (2*inter, H*W) activation.
    w1bs, w2bs = w1b * s1b, w2b * s2b                         # (3,3,inter,g)
    z = jnp.zeros_like(w1bs)
    wb = jnp.concatenate(
        [jnp.concatenate([w1bs, z], axis=-1),    # in chans 0:inter   -> branch1
         jnp.concatenate([z, w2bs], axis=-1)],   # in chans inter:2i  -> branch2
        axis=2)                                  # (3, 3, 2*inter, 2*g)
    ci2, g2 = wb.shape[2], wb.shape[3]
    wbT = jnp.transpose(wb, (0, 1, 3, 2)).reshape(9, g2, ci2)  # (9, 2g, 2i)
    bb = jnp.concatenate([b1b, b2b]).reshape(-1, 1)            # (2g, 1)

    w2cs = w2c * s2c
    g = w2cs.shape[-1]
    wcT = jnp.transpose(w2cs, (0, 1, 3, 2)).reshape(9, g, g)   # (9, g, g)
    bc = b2c.reshape(-1, 1)

    cd = compute_dtype
    return (waT.astype(cd), ba.astype(jnp.float32),
            wbT.astype(cd), bb.astype(jnp.float32),
            wcT.astype(cd), bc.astype(jnp.float32))


def dense_layer_forward(x_nchw, params, *, compute_dtype=jnp.bfloat16):
    """PyTorch-compatible _DenseLayer forward. Input/output are NCHW."""
    n, cin, h, w = x_nchw.shape
    waT, ba, wbT, bb, wcT, bc = _fuse_dense_layer_params(params, compute_dtype)
    ci2 = waT.shape[0]          # 2*inter
    g2 = wbT.shape[1]           # 2*growth
    g = wcT.shape[1]            # growth
    inter = ci2 // 2
    ctot = cin + g2
    hw = h * w

    x_cs = x_nchw.reshape(n, cin, hw)   # contiguous reshape, no data movement

    flops = 2 * n * hw * (cin * ci2 + 9 * inter * g * 2 + 9 * g * g)
    bytes_accessed = (
        (x_cs.size + n * ctot * hw) * x_nchw.dtype.itemsize
        + sum(int(a.size) * a.dtype.itemsize
              for a in (waT, ba, wbT, bb, wcT, bc)))

    kernel = functools.partial(_dense_layer_kernel, w=w)

    out = pl.pallas_call(
        kernel,
        out_shape=jax.ShapeDtypeStruct((n, ctot, hw), x_nchw.dtype),
        grid_spec=pltpu.PrefetchScalarGridSpec(
            num_scalar_prefetch=0,
            grid=(n,),
            in_specs=[
                pl.BlockSpec((1, cin, hw), lambda b: (b, 0, 0)),
                pl.BlockSpec((ci2, cin), lambda b: (0, 0)),
                pl.BlockSpec((ci2, 1), lambda b: (0, 0)),
                pl.BlockSpec((9, g2, ci2), lambda b: (0, 0, 0)),
                pl.BlockSpec((g2, 1), lambda b: (0, 0)),
                pl.BlockSpec((9, g, g), lambda b: (0, 0, 0)),
                pl.BlockSpec((g, 1), lambda b: (0, 0)),
            ],
            out_specs=pl.BlockSpec((1, ctot, hw), lambda b: (b, 0, 0)),
        ),
        compiler_params=pltpu.CompilerParams(
            dimension_semantics=("parallel",),
            vmem_limit_bytes=32 * 1024 * 1024),
        cost_estimate=pl.CostEstimate(
            flops=int(flops), transcendentals=0,
            bytes_accessed=int(bytes_accessed)),
    )(x_cs, waT, ba, wbT, bb, wcT, bc)

    return out.reshape(n, ctot, h, w)   # already channels-major -> NCHW


# ----------------------- parameter construction (test) -----------------------


def _fold_bn(gamma, beta, mean, var, eps=1e-5):
    scale = gamma / jnp.sqrt(var + eps)
    bias = beta - mean * scale
    return scale, bias


def _make_basic_conv_params(key, cin, cout, ksize):
    kw_, kbn = jax.random.split(key)
    if ksize == 1:
        w = 0.1 * jax.random.normal(kw_, (cin, cout), jnp.float32)
    else:
        w = 0.1 * jax.random.normal(kw_, (ksize, ksize, cin, cout), jnp.float32)
    k1, k2, k3, k4 = jax.random.split(kbn, 4)
    gamma = 1.0 + 0.1 * jax.random.normal(k1, (cout,), jnp.float32)
    beta = 0.1 * jax.random.normal(k2, (cout,), jnp.float32)
    mean = 0.1 * jax.random.normal(k3, (cout,), jnp.float32)
    var = 1.0 + 0.1 * jax.random.uniform(k4, (cout,), jnp.float32)
    scale, bias = _fold_bn(gamma, beta, mean, var)
    return (w, scale, bias)


def make_dense_layer_params(key, num_input_features, growth_rate, bottleneck_width):
    growth = int(growth_rate / 2)
    inter = int(growth * bottleneck_width / 4) * 4
    if inter > num_input_features / 2:
        inter = int(num_input_features / 8) * 4
    ks = jax.random.split(key, 5)
    return {
        "branch1a": _make_basic_conv_params(ks[0], num_input_features, inter, 1),
        "branch1b": _make_basic_conv_params(ks[1], inter, growth, 3),
        "branch2a": _make_basic_conv_params(ks[2], num_input_features, inter, 1),
        "branch2b": _make_basic_conv_params(ks[3], inter, growth, 3),
        "branch2c": _make_basic_conv_params(ks[4], growth, growth, 3),
    }


# ------------------------------ pure-JAX reference ---------------------------


def _ref_conv_bn_relu(x, w, scale, bias, ksize):
    if ksize == 1:
        w4 = w.reshape(1, 1, w.shape[0], w.shape[1])
        pad = "VALID"
    else:
        w4 = w
        pad = [(1, 1), (1, 1)]
    y = jax.lax.conv_general_dilated(
        x, w4, (1, 1), pad, dimension_numbers=("NHWC", "HWIO", "NHWC"))
    return jnp.maximum(y * scale + bias, 0.0)


def dense_layer_reference(x_nchw, params):
    x = jnp.transpose(x_nchw, (0, 2, 3, 1))
    b1 = _ref_conv_bn_relu(x, *params["branch1a"], 1)
    b1 = _ref_conv_bn_relu(b1, *params["branch1b"], 3)
    b2 = _ref_conv_bn_relu(x, *params["branch2a"], 1)
    b2 = _ref_conv_bn_relu(b2, *params["branch2b"], 3)
    b2 = _ref_conv_bn_relu(b2, *params["branch2c"], 3)
    out = jnp.concatenate([x, b1, b2], axis=-1)
    return jnp.transpose(out, (0, 3, 1, 2))


# ----------------------------------- main ------------------------------------


if __name__ == "__main__":
    key = jax.random.PRNGKey(0)
    kx, kp = jax.random.split(key)

    N, C, H, W = 2, 32, 16, 16            # num_input_features=32
    growth_rate, bottleneck_width = 16, 2

    x = jax.random.normal(kx, (N, C, H, W), jnp.float32)   # NCHW like PyTorch
    params = make_dense_layer_params(kp, C, growth_rate, bottleneck_width)

    ref = jax.block_until_ready(dense_layer_reference(x, params))
    expected_shape = (N, C + 2 * (growth_rate // 2), H, W)   # 48 out channels

    # f32 MXU operands: tight check against the f32 reference.
    fwd_f32 = jax.jit(functools.partial(dense_layer_forward,
                                        compute_dtype=jnp.float32))
    out_f32 = jax.block_until_ready(fwd_f32(x, params))
    assert out_f32.shape == expected_shape, out_f32.shape
    err_f32 = float(jnp.max(jnp.abs(out_f32 - ref)))
    assert jnp.allclose(out_f32, ref, rtol=2e-2, atol=2e-2), err_f32

    # bf16 MXU operands (default; v6e/v7x-native MXU): looser tolerance.
    out_bf16 = jax.block_until_ready(jax.jit(dense_layer_forward)(x, params))
    assert out_bf16.shape == expected_shape, out_bf16.shape
    err_bf16 = float(jnp.max(jnp.abs(out_bf16 - ref)))
    assert jnp.allclose(out_bf16, ref, rtol=6e-2, atol=6e-2), err_bf16

    print("KERNEL_OK")
</pallas_src>

<mosaic_0001>
module attributes {stable_mosaic.version = 11 : i64} {
  func.func @_dense_layer_kernel(%arg0: i32, %arg1: memref<1x32x256xf32, #tpu.memory_space<vmem>>, %arg2: memref<32x32xf32, #tpu.memory_space<vmem>>, %arg3: memref<32x1xf32, #tpu.memory_space<vmem>>, %arg4: memref<9x16x32xf32, #tpu.memory_space<vmem>>, %arg5: memref<16x1xf32, #tpu.memory_space<vmem>>, %arg6: memref<9x8x8xf32, #tpu.memory_space<vmem>>, %arg7: memref<8x1xf32, #tpu.memory_space<vmem>>, %arg8: memref<1x48x256xf32, #tpu.memory_space<vmem>>) attributes {dimension_semantics = [#tpu.dimension_semantics<parallel>], iteration_bounds = array<i64: 2>, scalar_prefetch = 0 : i64, scratch_operands = 0 : i64, tpu.core_type = #tpu.core_type<tc>, window_params = [{transform_indices = @transform_0, window_bounds = array<i64: 1, 32, 256>}, {pipeline_mode = #tpu.pipeline_mode<synchronous>, transform_indices = @transform_1, window_bounds = array<i64: 32, 32>}, {pipeline_mode = #tpu.pipeline_mode<synchronous>, transform_indices = @transform_2, window_bounds = array<i64: 32, 1>}, {pipeline_mode = #tpu.pipeline_mode<synchronous>, transform_indices = @transform_3, window_bounds = array<i64: 9, 16, 32>}, {pipeline_mode = #tpu.pipeline_mode<synchronous>, transform_indices = @transform_4, window_bounds = array<i64: 16, 1>}, {pipeline_mode = #tpu.pipeline_mode<synchronous>, transform_indices = @transform_5, window_bounds = array<i64: 9, 8, 8>}, {pipeline_mode = #tpu.pipeline_mode<synchronous>, transform_indices = @transform_6, window_bounds = array<i64: 8, 1>}, {transform_indices = @transform_7, window_bounds = array<i64: 1, 48, 256>}]} {
    %c0 = arith.constant 0 : index
    %c0_0 = arith.constant 0 : index
    %c0_1 = arith.constant 0 : index
    %0 = vector.load %arg1[%c0, %c0_0, %c0_1] : memref<1x32x256xf32, #tpu.memory_space<vmem>>, vector<1x32x256xf32>
    %1 = vector.shape_cast %0 : vector<1x32x256xf32> to vector<32x256xf32>
    %c0_2 = arith.constant 0 : index
    %c0_3 = arith.constant 0 : index
    %c0_4 = arith.constant 0 : index
    %2 = vector.load %arg8[%c0_2, %c0_3, %c0_4] : memref<1x48x256xf32, #tpu.memory_space<vmem>>, vector<1x32x256xf32>
    %3 = vector.shape_cast %2 : vector<1x32x256xf32> to vector<32x256xf32>
    %4 = vector.shape_cast %1 : vector<32x256xf32> to vector<1x32x256xf32>
    tpu.vector_store %arg8[%c0_2, %c0_3, %c0_4], %4 {strides = array<i32>} : memref<1x48x256xf32, #tpu.memory_space<vmem>>, vector<1x32x256xf32>,
    %5 = tpu.iota {dimensions = array<i32: 1>} : vector<1x256xi32>
    %c16_i32 = arith.constant 16 : i32
    %c0_i32 = arith.constant 0 : i32
    %6 = arith.cmpi eq, %c16_i32, %c0_i32 : i32
    %c1_i32 = arith.constant 1 : i32
    %7 = arith.select %6, %c1_i32, %c16_i32 : i32
    %8 = vector.broadcast %7 : i32 to vector<1x256xi32>
    %9 = arith.remsi %5, %8 : vector<1x256xi32>
    %c0_i32_5 = arith.constant 0 : i32
    %10 = vector.broadcast %c0_i32_5 : i32 to vector<1x256xi32>
    %11 = arith.cmpi ne, %9, %10 : vector<1x256xi32>
    %c0_i32_6 = arith.constant 0 : i32
    %12 = vector.broadcast %c0_i32_6 : i32 to vector<1x256xi32>
    %13 = arith.cmpi slt, %9, %12 : vector<1x256xi32>
    %c0_i32_7 = arith.constant 0 : i32
    %14 = arith.cmpi slt, %7, %c0_i32_7 : i32
    %15 = vector.broadcast %14 : i1 to vector<1x256xi1>
    %16 = vector.broadcast %15 : vector<1x256xi1> to vector<1x256xi1>
    %17 = arith.xori %13, %16 : vector<1x256xi1>
    %18 = arith.andi %17, %11 : vector<1x256xi1>
    %19 = vector.broadcast %7 : i32 to vector<1x256xi32>
    %20 = arith.addi %9, %19 : vector<1x256xi32>
    %21 = arith.select %18, %20, %9 : vector<1x256xi1>, vector<1x256xi32>
    %c0_i32_8 = arith.constant 0 : i32
    %22 = vector.broadcast %c0_i32_8 : i32 to vector<1x256xi32>
    %23 = arith.cmpi ne, %21, %22 : vector<1x256xi32>
    %c15_i32 = arith.constant 15 : i32
    %24 = vector.broadcast %c15_i32 : i32 to vector<1x256xi32>
    %25 = arith.cmpi ne, %21, %24 : vector<1x256xi32>
    %c0_9 = arith.constant 0 : index
    %c0_10 = arith.constant 0 : index
    %26 = vector.load %arg2[%c0_9, %c0_10] : memref<32x32xf32, #tpu.memory_space<vmem>>, vector<32x32xf32>
    %cst = arith.constant dense<0.000000e+00> : vector<32x256xf32>
    %27 = tpu.matmul %26, %1, %cst {dimension_numbers = #tpu.dot_dimension_numbers<[1], [0], [0], [1], [0, 0, 1, 1], [], []>} : vector<32x32xf32>, vector<32x256xf32>, vector<32x256xf32> -> vector<32x256xf32>
    %c0_11 = arith.constant 0 : index
    %c0_12 = arith.constant 0 : index
    %28 = vector.load %arg3[%c0_11, %c0_12] : memref<32x1xf32, #tpu.memory_space<vmem>>, vector<32x1xf32>
    %29 = vector.broadcast %28 : vector<32x1xf32> to vector<32x256xf32>
    %30 = arith.addf %27, %29 : vector<32x256xf32>
    %cst_13 = arith.constant 0.000000e+00 : f32
    %31 = vector.broadcast %cst_13 : f32 to vector<32x256xf32>
    %32 = arith.maximumf %30, %31 : vector<32x256xf32>
    %cst_14 = arith.constant 0.000000e+00 : f32
    %33 = vector.broadcast %cst_14 : f32 to vector<32x17xf32>
    %34 = vector.extract_strided_slice %32 {offsets = [0, 0], sizes = [32, 239], strides = [1, 1]} : vector<32x256xf32> to vector<32x239xf32>
    %35 = tpu.concatenate %33, %34 in 1 : vector<32x17xf32>, vector<32x239xf32> -> vector<32x256xf32>
    %cst_15 = arith.constant 0.000000e+00 : f32
    %36 = vector.shape_cast %23 : vector<1x256xi1> to vector<1x256xi1>
    %37 = vector.broadcast %36 : vector<1x256xi1> to vector<32x256xi1>
    %38 = vector.broadcast %cst_15 : f32 to vector<32x256xf32>
    %39 = arith.select %37, %35, %38 : vector<32x256xi1>, vector<32x256xf32>
    %c0_16 = arith.constant 0 : index
    %c0_17 = arith.constant 0 : index
    %c0_18 = arith.constant 0 : index
    %40 = vector.load %arg4[%c0_16, %c0_17, %c0_18] : memref<9x16x32xf32, #tpu.memory_space<vmem>>, vector<1x16x32xf32>
    %41 = vector.shape_cast %40 : vector<1x16x32xf32> to vector<16x32xf32>
    %cst_19 = arith.constant dense<0.000000e+00> : vector<16x256xf32>
    %42 = tpu.matmul %41, %39, %cst_19 {dimension_numbers = #tpu.dot_dimension_numbers<[1], [0], [0], [1], [0, 0, 1, 1], [], []>} : vector<16x32xf32>, vector<32x256xf32>, vector<16x256xf32> -> vector<16x256xf32>
    %cst_20 = arith.constant 0.000000e+00 : f32
    %43 = vector.broadcast %cst_20 : f32 to vector<32x16xf32>
    %44 = vector.extract_strided_slice %32 {offsets = [0, 0], sizes = [32, 240], strides = [1, 1]} : vector<32x256xf32> to vector<32x240xf32>
    %45 = tpu.concatenate %43, %44 in 1 : vector<32x16xf32>, vector<32x240xf32> -> vector<32x256xf32>
    %c1 = arith.constant 1 : index
    %c0_21 = arith.constant 0 : index
    %c0_22 = arith.constant 0 : index
    %46 = vector.load %arg4[%c1, %c0_21, %c0_22] : memref<9x16x32xf32, #tpu.memory_space<vmem>>, vector<1x16x32xf32>
    %47 = vector.shape_cast %46 : vector<1x16x32xf32> to vector<16x32xf32>
    %cst_23 = arith.constant dense<0.000000e+00> : vector<16x256xf32>
    %48 = tpu.matmul %47, %45, %cst_23 {dimension_numbers = #tpu.dot_dimension_numbers<[1], [0], [0], [1], [0, 0, 1, 1], [], []>} : vector<16x32xf32>, vector<32x256xf32>, vector<16x256xf32> -> vector<16x256xf32>
    %49 = arith.addf %42, %48 : vector<16x256xf32>
    %cst_24 = arith.constant 0.000000e+00 : f32
    %50 = vector.broadcast %cst_24 : f32 to vector<32x15xf32>
    %51 = vector.extract_strided_slice %32 {offsets = [0, 0], sizes = [32, 241], strides = [1, 1]} : vector<32x256xf32> to vector<32x241xf32>
    %52 = tpu.concatenate %50, %51 in 1 : vector<32x15xf32>, vector<32x241xf32> -> vector<32x256xf32>
    %cst_25 = arith.constant 0.000000e+00 : f32
    %53 = vector.shape_cast %25 : vector<1x256xi1> to vector<1x256xi1>
    %54 = vector.broadcast %53 : vector<1x256xi1> to vector<32x256xi1>
    %55 = vector.broadcast %cst_25 : f32 to vector<32x256xf32>
    %56 = arith.select %54, %52, %55 : vector<32x256xi1>, vector<32x256xf32>
    %c2 = arith.constant 2 : index
    %c0_26 = arith.constant 0 : index
    %c0_27 = arith.constant 0 : index
    %57 = vector.load %arg4[%c2, %c0_26, %c0_27] : memref<9x16x32xf32, #tpu.memory_space<vmem>>, vector<1x16x32xf32>
    %58 = vector.shape_cast %57 : vector<1x16x32xf32> to vector<16x32xf32>
    %cst_28 = arith.constant dense<0.000000e+00> : vector<16x256xf32>
    %59 = tpu.matmul %58, %56, %cst_28 {dimension_numbers = #tpu.dot_dimension_numbers<[1], [0], [0], [1], [0, 0, 1, 1], [], []>} : vector<16x32xf32>, vector<32x256xf32>, vector<16x256xf32> -> vector<16x256xf32>
    %60 = arith.addf %49, %59 : vector<16x256xf32>
    %cst_29 = arith.constant 0.000000e+00 : f32
    %61 = vector.broadcast %cst_29 : f32 to vector<32x1xf32>
    %62 = vector.extract_strided_slice %32 {offsets = [0, 0], sizes = [32, 255], strides = [1, 1]} : vector<32x256xf32> to vector<32x255xf32>
    %63 = tpu.concatenate %61, %62 in 1 : vector<32x1xf32>, vector<32x255xf32> -> vector<32x256xf32>
    %cst_30 = arith.constant 0.000000e+00 : f32
    %64 = vector.shape_cast %23 : vector<1x256xi1> to vector<1x256xi1>
    %65 = vector.broadcast %64 : vector<1x256xi1> to vector<32x256xi1>
    %66 = vector.broadcast %cst_30 : f32 to vector<32x256xf32>
    %67 = arith.select %65, %63, %66 : vector<32x256xi1>, vector<32x256xf32>
    %c3 = arith.constant 3 : index
    %c0_31 = arith.constant 0 : index
    %c0_32 = arith.constant 0 : index
    %68 = vector.load %arg4[%c3, %c0_31, %c0_32] : memref<9x16x32xf32, #tpu.memory_space<vmem>>, vector<1x16x32xf32>
    %69 = vector.shape_cast %68 : vector<1x16x32xf32> to vector<16x32xf32>
    %cst_33 = arith.constant dense<0.000000e+00> : vector<16x256xf32>
    %70 = tpu.matmul %69, %67, %cst_33 {dimension_numbers = #tpu.dot_dimension_numbers<[1], [0], [0], [1], [0, 0, 1, 1], [], []>} : vector<16x32xf32>, vector<32x256xf32>, vector<16x256xf32> -> vector<16x256xf32>
    %71 = arith.addf %60, %70 : vector<16x256xf32>
    %c4 = arith.constant 4 : index
    %c0_34 = arith.constant 0 : index
    %c0_35 = arith.constant 0 : index
    %72 = vector.load %arg4[%c4, %c0_34, %c0_35] : memref<9x16x32xf32, #tpu.memory_space<vmem>>, vector<1x16x32xf32>
    %73 = vector.shape_cast %72 : vector<1x16x32xf32> to vector<16x32xf32>
    %cst_36 = arith.constant dense<0.000000e+00> : vector<16x256xf32>
    %74 = tpu.matmul %73, %32, %cst_36 {dimension_numbers = #tpu.dot_dimension_numbers<[1], [0], [0], [1], [0, 0, 1, 1], [], []>} : vector<16x32xf32>, vector<32x256xf32>, vector<16x256xf32> -> vector<16x256xf32>
    %75 = arith.addf %71, %74 : vector<16x256xf32>
    %cst_37 = arith.constant 0.000000e+00 : f32
    %76 = vector.broadcast %cst_37 : f32 to vector<32x1xf32>
    %77 = vector.extract_strided_slice %32 {offsets = [0, 1], sizes = [32, 255], strides = [1, 1]} : vector<32x256xf32> to vector<32x255xf32>
    %78 = tpu.concatenate %77, %76 in 1 : vector<32x255xf32>, vector<32x1xf32> -> vector<32x256xf32>
    %cst_38 = arith.constant 0.000000e+00 : f32
    %79 = vector.shape_cast %25 : vector<1x256xi1> to vector<1x256xi1>
    %80 = vector.broadcast %79 : vector<1x256xi1> to vector<32x256xi1>
    %81 = vector.broadcast %cst_38 : f32 to vector<32x256xf32>
    %82 = arith.select %80, %78, %81 : vector<32x256xi1>, vector<32x256xf32>
    %c5 = arith.constant 5 : index
    %c0_39 = arith.constant 0 : index
    %c0_40 = arith.constant 0 : index
    %83 = vector.load %arg4[%c5, %c0_39, %c0_40] : memref<9x16x32xf32, #tpu.memory_space<vmem>>, vector<1x16x32xf32>
    %84 = vector.shape_cast %83 : vector<1x16x32xf32> to vector<16x32xf32>
    %cst_41 = arith.constant dense<0.000000e+00> : vector<16x256xf32>
    %85 = tpu.matmul %84, %82, %cst_41 {dimension_numbers = #tpu.dot_dimension_numbers<[1], [0], [0], [1], [0, 0, 1, 1], [], []>} : vector<16x32xf32>, vector<32x256xf32>, vector<16x256xf32> -> vector<16x256xf32>
    %86 = arith.addf %75, %85 : vector<16x256xf32>
    %cst_42 = arith.constant 0.000000e+00 : f32
    %87 = vector.broadcast %cst_42 : f32 to vector<32x15xf32>
    %88 = vector.extract_strided_slice %32 {offsets = [0, 15], sizes = [32, 241], strides = [1, 1]} : vector<32x256xf32> to vector<32x241xf32>
    %89 = tpu.concatenate %88, %87 in 1 : vector<32x241xf32>, vector<32x15xf32> -> vector<32x256xf32>
    %cst_43 = arith.constant 0.000000e+00 : f32
    %90 = vector.shape_cast %23 : vector<1x256xi1> to vector<1x256xi1>
    %91 = vector.broadcast %90 : vector<1x256xi1> to vector<32x256xi1>
    %92 = vector.broadcast %cst_43 : f32 to vector<32x256xf32>
    %93 = arith.select %91, %89, %92 : vector<32x256xi1>, vector<32x256xf32>
    %c6 = arith.constant 6 : index
    %c0_44 = arith.constant 0 : index
    %c0_45 = arith.constant 0 : index
    %94 = vector.load %arg4[%c6, %c0_44, %c0_45] : memref<9x16x32xf32, #tpu.memory_space<vmem>>, vector<1x16x32xf32>
    %95 = vector.shape_cast %94 : vector<1x16x32xf32> to vector<16x32xf32>
    %cst_46 = arith.constant dense<0.000000e+00> : vector<16x256xf32>
    %96 = tpu.matmul %95, %93, %cst_46 {dimension_numbers = #tpu.dot_dimension_numbers<[1], [0], [0], [1], [0, 0, 1, 1], [], []>} : vector<16x32xf32>, vector<32x256xf32>, vector<16x256xf32> -> vector<16x256xf32>
    %97 = arith.addf %86, %96 : vector<16x256xf32>
    %cst_47 = arith.constant 0.000000e+00 : f32
    %98 = vector.broadcast %cst_47 : f32 to vector<32x16xf32>
    %99 = vector.extract_strided_slice %32 {offsets = [0, 16], sizes = [32, 240], strides = [1, 1]} : vector<32x256xf32> to vector<32x240xf32>
    %100 = tpu.concatenate %99, %98 in 1 : vector<32x240xf32>, vector<32x16xf32> -> vector<32x256xf32>
    %c7 = arith.constant 7 : index
    %c0_48 = arith.constant 0 : index
    %c0_49 = arith.constant 0 : index
    %101 = vector.load %arg4[%c7, %c0_48, %c0_49] : memref<9x16x32xf32, #tpu.memory_space<vmem>>, vector<1x16x32xf32>
    %102 = vector.shape_cast %101 : vector<1x16x32xf32> to vector<16x32xf32>
    %cst_50 = arith.constant dense<0.000000e+00> : vector<16x256xf32>
    %103 = tpu.matmul %102, %100, %cst_50 {dimension_numbers = #tpu.dot_dimension_numbers<[1], [0], [0], [1], [0, 0, 1, 1], [], []>} : vector<16x32xf32>, vector<32x256xf32>, vector<16x256xf32> -> vector<16x256xf32>
    %104 = arith.addf %97, %103 : vector<16x256xf32>
    %cst_51 = arith.constant 0.000000e+00 : f32
    %105 = vector.broadcast %cst_51 : f32 to vector<32x17xf32>
    %106 = vector.extract_strided_slice %32 {offsets = [0, 17], sizes = [32, 239], strides = [1, 1]} : vector<32x256xf32> to vector<32x239xf32>
    %107 = tpu.concatenate %106, %105 in 1 : vector<32x239xf32>, vector<32x17xf32> -> vector<32x256xf32>
    %cst_52 = arith.constant 0.000000e+00 : f32
    %108 = vector.shape_cast %25 : vector<1x256xi1> to vector<1x256xi1>
    %109 = vector.broadcast %108 : vector<1x256xi1> to vector<32x256xi1>
    %110 = vector.broadcast %cst_52 : f32 to vector<32x256xf32>
    %111 = arith.select %109, %107, %110 : vector<32x256xi1>, vector<32x256xf32>
    %c8 = arith.constant 8 : index
    %c0_53 = arith.constant 0 : index
    %c0_54 = arith.constant 0 : index
    %112 = vector.load %arg4[%c8, %c0_53, %c0_54] : memref<9x16x32xf32, #tpu.memory_space<vmem>>, vector<1x16x32xf32>
    %113 = vector.shape_cast %112 : vector<1x16x32xf32> to vector<16x32xf32>
    %cst_55 = arith.constant dense<0.000000e+00> : vector<16x256xf32>
    %114 = tpu.matmul %113, %111, %cst_55 {dimension_numbers = #tpu.dot_dimension_numbers<[1], [0], [0], [1], [0, 0, 1, 1], [], []>} : vector<16x32xf32>, vector<32x256xf32>, vector<16x256xf32> -> vector<16x256xf32>
    %115 = arith.addf %104, %114 : vector<16x256xf32>
    %c0_56 = arith.constant 0 : index
    %c0_57 = arith.constant 0 : index
    %116 = vector.load %arg5[%c0_56, %c0_57] : memref<16x1xf32, #tpu.memory_space<vmem>>, vector<16x1xf32>
    %117 = vector.broadcast %116 : vector<16x1xf32> to vector<16x256xf32>
    %118 = arith.addf %115, %117 : vector<16x256xf32>
    %cst_58 = arith.constant 0.000000e+00 : f32
    %119 = vector.broadcast %cst_58 : f32 to vector<16x256xf32>
    %120 = arith.maximumf %118, %119 : vector<16x256xf32>
    %121 = vector.extract_strided_slice %120 {offsets = [0, 0], sizes = [8, 256], strides = [1, 1]} : vector<16x256xf32> to vector<8x256xf32>
    %c0_59 = arith.constant 0 : index
    %c32 = arith.constant 32 : index
    %c0_60 = arith.constant 0 : index
    %122 = vector.load %arg8[%c0_59, %c32, %c0_60] : memref<1x48x256xf32, #tpu.memory_space<vmem>>, vector<1x8x256xf32>
    %123 = vector.shape_cast %122 : vector<1x8x256xf32> to vector<8x256xf32>
    %124 = vector.shape_cast %121 : vector<8x256xf32> to vector<1x8x256xf32>
    tpu.vector_store %arg8[%c0_59, %c32, %c0_60], %124 {strides = array<i32>} : memref<1x48x256xf32, #tpu.memory_space<vmem>>, vector<1x8x256xf32>,
    %125 = vector.extract_strided_slice %120 {offsets = [8, 0], sizes = [8, 256], strides = [1, 1]} : vector<16x256xf32> to vector<8x256xf32>
    %cst_61 = arith.constant 0.000000e+00 : f32
    %126 = vector.broadcast %cst_61 : f32 to vector<8x17xf32>
    %127 = vector.extract_strided_slice %125 {offsets = [0, 0], sizes = [8, 239], strides = [1, 1]} : vector<8x256xf32> to vector<8x239xf32>
    %128 = tpu.concatenate %126, %127 in 1 : vector<8x17xf32>, vector<8x239xf32> -> vector<8x256xf32>
    %cst_62 = arith.constant 0.000000e+00 : f32
    %129 = vector.shape_cast %23 : vector<1x256xi1> to vector<1x256xi1>
    %130 = vector.broadcast %129 : vector<1x256xi1> to vector<8x256xi1>
    %131 = vector.broadcast %cst_62 : f32 to vector<8x256xf32>
    %132 = arith.select %130, %128, %131 : vector<8x256xi1>, vector<8x256xf32>
    %c0_63 = arith.constant 0 : index
    %c0_64 = arith.constant 0 : index
    %c0_65 = arith.constant 0 : index
    %133 = vector.load %arg6[%c0_63, %c0_64, %c0_65] : memref<9x8x8xf32, #tpu.memory_space<vmem>>, vector<1x8x8xf32>
    %134 = vector.shape_cast %133 : vector<1x8x8xf32> to vector<8x8xf32>
    %cst_66 = arith.constant dense<0.000000e+00> : vector<8x256xf32>
    %135 = tpu.matmul %134, %132, %cst_66 {dimension_numbers = #tpu.dot_dimension_numbers<[1], [0], [0], [1], [0, 0, 1, 1], [], []>} : vector<8x8xf32>, vector<8x256xf32>, vector<8x256xf32> -> vector<8x256xf32>
    %cst_67 = arith.constant 0.000000e+00 : f32
    %136 = vector.broadcast %cst_67 : f32 to vector<8x16xf32>
    %137 = vector.extract_strided_slice %125 {offsets = [0, 0], sizes = [8, 240], strides = [1, 1]} : vector<8x256xf32> to vector<8x240xf32>
    %138 = tpu.concatenate %136, %137 in 1 : vector<8x16xf32>, vector<8x240xf32> -> vector<8x256xf32>
    %c1_68 = arith.constant 1 : index
    %c0_69 = arith.constant 0 : index
    %c0_70 = arith.constant 0 : index
    %139 = vector.load %arg6[%c1_68, %c0_69, %c0_70] : memref<9x8x8xf32, #tpu.memory_space<vmem>>, vector<1x8x8xf32>
    %140 = vector.shape_cast %139 : vector<1x8x8xf32> to vector<8x8xf32>
    %cst_71 = arith.constant dense<0.000000e+00> : vector<8x256xf32>
    %141 = tpu.matmul %140, %138, %cst_71 {dimension_numbers = #tpu.dot_dimension_numbers<[1], [0], [0], [1], [0, 0, 1, 1], [], []>} : vector<8x8xf32>, vector<8x256xf32>, vector<8x256xf32> -> vector<8x256xf32>
    %142 = arith.addf %135, %141 : vector<8x256xf32>
    %cst_72 = arith.constant 0.000000e+00 : f32
    %143 = vector.broadcast %cst_72 : f32 to vector<8x15xf32>
    %144 = vector.extract_strided_slice %125 {offsets = [0, 0], sizes = [8, 241], strides = [1, 1]} : vector<8x256xf32> to vector<8x241xf32>
    %145 = tpu.concatenate %143, %144 in 1 : vector<8x15xf32>, vector<8x241xf32> -> vector<8x256xf32>
    %cst_73 = arith.constant 0.000000e+00 : f32
    %146 = vector.shape_cast %25 : vector<1x256xi1> to vector<1x256xi1>
    %147 = vector.broadcast %146 : vector<1x256xi1> to vector<8x256xi1>
    %148 = vector.broadcast %cst_73 : f32 to vector<8x256xf32>
    %149 = arith.select %147, %145, %148 : vector<8x256xi1>, vector<8x256xf32>
    %c2_74 = arith.constant 2 : index
    %c0_75 = arith.constant 0 : index
    %c0_76 = arith.constant 0 : index
    %150 = vector.load %arg6[%c2_74, %c0_75, %c0_76] : memref<9x8x8xf32, #tpu.memory_space<vmem>>, vector<1x8x8xf32>
    %151 = vector.shape_cast %150 : vector<1x8x8xf32> to vector<8x8xf32>
    %cst_77 = arith.constant dense<0.000000e+00> : vector<8x256xf32>
    %152 = tpu.matmul %151, %149, %cst_77 {dimension_numbers = #tpu.dot_dimension_numbers<[1], [0], [0], [1], [0, 0, 1, 1], [], []>} : vector<8x8xf32>, vector<8x256xf32>, vector<8x256xf32> -> vector<8x256xf32>
    %153 = arith.addf %142, %152 : vector<8x256xf32>
    %cst_78 = arith.constant 0.000000e+00 : f32
    %154 = vector.broadcast %cst_78 : f32 to vector<8x1xf32>
    %155 = vector.extract_strided_slice %125 {offsets = [0, 0], sizes = [8, 255], strides = [1, 1]} : vector<8x256xf32> to vector<8x255xf32>
    %156 = tpu.concatenate %154, %155 in 1 : vector<8x1xf32>, vector<8x255xf32> -> vector<8x256xf32>
    %cst_79 = arith.constant 0.000000e+00 : f32
    %157 = vector.shape_cast %23 : vector<1x256xi1> to vector<1x256xi1>
    %158 = vector.broadcast %157 : vector<1x256xi1> to vector<8x256xi1>
    %159 = vector.broadcast %cst_79 : f32 to vector<8x256xf32>
    %160 = arith.select %158, %156, %159 : vector<8x256xi1>, vector<8x256xf32>
    %c3_80 = arith.constant 3 : index
    %c0_81 = arith.constant 0 : index
    %c0_82 = arith.constant 0 : index
    %161 = vector.load %arg6[%c3_80, %c0_81, %c0_82] : memref<9x8x8xf32, #tpu.memory_space<vmem>>, vector<1x8x8xf32>
    %162 = vector.shape_cast %161 : vector<1x8x8xf32> to vector<8x8xf32>
    %cst_83 = arith.constant dense<0.000000e+00> : vector<8x256xf32>
    %163 = tpu.matmul %162, %160, %cst_83 {dimension_numbers = #tpu.dot_dimension_numbers<[1], [0], [0], [1], [0, 0, 1, 1], [], []>} : vector<8x8xf32>, vector<8x256xf32>, vector<8x256xf32> -> vector<8x256xf32>
    %164 = arith.addf %153, %163 : vector<8x256xf32>
    %c4_84 = arith.constant 4 : index
    %c0_85 = arith.constant 0 : index
    %c0_86 = arith.constant 0 : index
    %165 = vector.load %arg6[%c4_84, %c0_85, %c0_86] : memref<9x8x8xf32, #tpu.memory_space<vmem>>, vector<1x8x8xf32>
    %166 = vector.shape_cast %165 : vector<1x8x8xf32> to vector<8x8xf32>
    %cst_87 = arith.constant dense<0.000000e+00> : vector<8x256xf32>
    %167 = tpu.matmul %166, %125, %cst_87 {dimension_numbers = #tpu.dot_dimension_numbers<[1], [0], [0], [1], [0, 0, 1, 1], [], []>} : vector<8x8xf32>, vector<8x256xf32>, vector<8x256xf32> -> vector<8x256xf32>
    %168 = arith.addf %164, %167 : vector<8x256xf32>
    %cst_88 = arith.constant 0.000000e+00 : f32
    %169 = vector.broadcast %cst_88 : f32 to vector<8x1xf32>
    %170 = vector.extract_strided_slice %125 {offsets = [0, 1], sizes = [8, 255], strides = [1, 1]} : vector<8x256xf32> to vector<8x255xf32>
    %171 = tpu.concatenate %170, %169 in 1 : vector<8x255xf32>, vector<8x1xf32> -> vector<8x256xf32>
    %cst_89 = arith.constant 0.000000e+00 : f32
    %172 = vector.shape_cast %25 : vector<1x256xi1> to vector<1x256xi1>
    %173 = vector.broadcast %172 : vector<1x256xi1> to vector<8x256xi1>
    %174 = vector.broadcast %cst_89 : f32 to vector<8x256xf32>
    %175 = arith.select %173, %171, %174 : vector<8x256xi1>, vector<8x256xf32>
    %c5_90 = arith.constant 5 : index
    %c0_91 = arith.constant 0 : index
    %c0_92 = arith.constant 0 : index
    %176 = vector.load %arg6[%c5_90, %c0_91, %c0_92] : memref<9x8x8xf32, #tpu.memory_space<vmem>>, vector<1x8x8xf32>
    %177 = vector.shape_cast %176 : vector<1x8x8xf32> to vector<8x8xf32>
    %cst_93 = arith.constant dense<0.000000e+00> : vector<8x256xf32>
    %178 = tpu.matmul %177, %175, %cst_93 {dimension_numbers = #tpu.dot_dimension_numbers<[1], [0], [0], [1], [0, 0, 1, 1], [], []>} : vector<8x8xf32>, vector<8x256xf32>, vector<8x256xf32> -> vector<8x256xf32>
    %179 = arith.addf %168, %178 : vector<8x256xf32>
    %cst_94 = arith.constant 0.000000e+00 : f32
    %180 = vector.broadcast %cst_94 : f32 to vector<8x15xf32>
    %181 = vector.extract_strided_slice %125 {offsets = [0, 15], sizes = [8, 241], strides = [1, 1]} : vector<8x256xf32> to vector<8x241xf32>
    %182 = tpu.concatenate %181, %180 in 1 : vector<8x241xf32>, vector<8x15xf32> -> vector<8x256xf32>
    %cst_95 = arith.constant 0.000000e+00 : f32
    %183 = vector.shape_cast %23 : vector<1x256xi1> to vector<1x256xi1>
    %184 = vector.broadcast %183 : vector<1x256xi1> to vector<8x256xi1>
    %185 = vector.broadcast %cst_95 : f32 to vector<8x256xf32>
    %186 = arith.select %184, %182, %185 : vector<8x256xi1>, vector<8x256xf32>
    %c6_96 = arith.constant 6 : index
    %c0_97 = arith.constant 0 : index
    %c0_98 = arith.constant 0 : index
    %187 = vector.load %arg6[%c6_96, %c0_97, %c0_98] : memref<9x8x8xf32, #tpu.memory_space<vmem>>, vector<1x8x8xf32>
    %188 = vector.shape_cast %187 : vector<1x8x8xf32> to vector<8x8xf32>
    %cst_99 = arith.constant dense<0.000000e+00> : vector<8x256xf32>
    %189 = tpu.matmul %188, %186, %cst_99 {dimension_numbers = #tpu.dot_dimension_numbers<[1], [0], [0], [1], [0, 0, 1, 1], [], []>} : vector<8x8xf32>, vector<8x256xf32>, vector<8x256xf32> -> vector<8x256xf32>
    %190 = arith.addf %179, %189 : vector<8x256xf32>
    %cst_100 = arith.constant 0.000000e+00 : f32
    %191 = vector.broadcast %cst_100 : f32 to vector<8x16xf32>
    %192 = vector.extract_strided_slice %125 {offsets = [0, 16], sizes = [8, 240], strides = [1, 1]} : vector<8x256xf32> to vector<8x240xf32>
    %193 = tpu.concatenate %192, %191 in 1 : vector<8x240xf32>, vector<8x16xf32> -> vector<8x256xf32>
    %c7_101 = arith.constant 7 : index
    %c0_102 = arith.constant 0 : index
    %c0_103 = arith.constant 0 : index
    %194 = vector.load %arg6[%c7_101, %c0_102, %c0_103] : memref<9x8x8xf32, #tpu.memory_space<vmem>>, vector<1x8x8xf32>
    %195 = vector.shape_cast %194 : vector<1x8x8xf32> to vector<8x8xf32>
    %cst_104 = arith.constant dense<0.000000e+00> : vector<8x256xf32>
    %196 = tpu.matmul %195, %193, %cst_104 {dimension_numbers = #tpu.dot_dimension_numbers<[1], [0], [0], [1], [0, 0, 1, 1], [], []>} : vector<8x8xf32>, vector<8x256xf32>, vector<8x256xf32> -> vector<8x256xf32>
    %197 = arith.addf %190, %196 : vector<8x256xf32>
    %cst_105 = arith.constant 0.000000e+00 : f32
    %198 = vector.broadcast %cst_105 : f32 to vector<8x17xf32>
    %199 = vector.extract_strided_slice %125 {offsets = [0, 17], sizes = [8, 239], strides = [1, 1]} : vector<8x256xf32> to vector<8x239xf32>
    %200 = tpu.concatenate %199, %198 in 1 : vector<8x239xf32>, vector<8x17xf32> -> vector<8x256xf32>
    %cst_106 = arith.constant 0.000000e+00 : f32
    %201 = vector.shape_cast %25 : vector<1x256xi1> to vector<1x256xi1>
    %202 = vector.broadcast %201 : vector<1x256xi1> to vector<8x256xi1>
    %203 = vector.broadcast %cst_106 : f32 to vector<8x256xf32>
    %204 = arith.select %202, %200, %203 : vector<8x256xi1>, vector<8x256xf32>
    %c8_107 = arith.constant 8 : index
    %c0_108 = arith.constant 0 : index
    %c0_109 = arith.constant 0 : index
    %205 = vector.load %arg6[%c8_107, %c0_108, %c0_109] : memref<9x8x8xf32, #tpu.memory_space<vmem>>, vector<1x8x8xf32>
    %206 = vector.shape_cast %205 : vector<1x8x8xf32> to vector<8x8xf32>
    %cst_110 = arith.constant dense<0.000000e+00> : vector<8x256xf32>
    %207 = tpu.matmul %206, %204, %cst_110 {dimension_numbers = #tpu.dot_dimension_numbers<[1], [0], [0], [1], [0, 0, 1, 1], [], []>} : vector<8x8xf32>, vector<8x256xf32>, vector<8x256xf32> -> vector<8x256xf32>
    %208 = arith.addf %197, %207 : vector<8x256xf32>
    %c0_111 = arith.constant 0 : index
    %c0_112 = arith.constant 0 : index
    %209 = vector.load %arg7[%c0_111, %c0_112] : memref<8x1xf32, #tpu.memory_space<vmem>>, vector<8x1xf32>
    %210 = vector.broadcast %209 : vector<8x1xf32> to vector<8x256xf32>
    %211 = arith.addf %208, %210 : vector<8x256xf32>
    %cst_113 = arith.constant 0.000000e+00 : f32
    %212 = vector.broadcast %cst_113 : f32 to vector<8x256xf32>
    %213 = arith.maximumf %211, %212 : vector<8x256xf32>
    %c0_114 = arith.constant 0 : index
    %c40 = arith.constant 40 : index
    %c0_115 = arith.constant 0 : index
    %214 = vector.load %arg8[%c0_114, %c40, %c0_115] : memref<1x48x256xf32, #tpu.memory_space<vmem>>, vector<1x8x256xf32>
    %215 = vector.shape_cast %214 : vector<1x8x256xf32> to vector<8x256xf32>
    %216 = vector.shape_cast %213 : vector<8x256xf32> to vector<1x8x256xf32>
    tpu.vector_store %arg8[%c0_114, %c40, %c0_115], %216 {strides = array<i32>} : memref<1x48x256xf32, #tpu.memory_space<vmem>>, vector<1x8x256xf32>,
    return
  }
  func.func @transform_0(%arg0: i32) -> (i32, i32, i32) {
    %c0_i32 = arith.constant 0 : i32
    %c0_i32_0 = arith.constant 0 : i32
    %c0_i32_1 = arith.constant 0 : i32
    return %arg0, %c0_i32, %c0_i32_0 : i32, i32, i32
  }
  func.func @transform_1(%arg0: i32) -> (i32, i32) {
    %c0_i32 = arith.constant 0 : i32
    %c0_i32_0 = arith.constant 0 : i32
    %c0_i32_1 = arith.constant 0 : i32
    return %c0_i32, %c0_i32_0 : i32, i32
  }
  func.func @transform_2(%arg0: i32) -> (i32, i32) {
    %c0_i32 = arith.constant 0 : i32
    %c0_i32_0 = arith.constant 0 : i32
    %c0_i32_1 = arith.constant 0 : i32
    return %c0_i32, %c0_i32_0 : i32, i32
  }
  func.func @transform_3(%arg0: i32) -> (i32, i32, i32) {
    %c0_i32 = arith.constant 0 : i32
    %c0_i32_0 = arith.constant 0 : i32
    %c0_i32_1 = arith.constant 0 : i32
    %c0_i32_2 = arith.constant 0 : i32
    return %c0_i32, %c0_i32_0, %c0_i32_1 : i32, i32, i32
  }
  func.func @transform_4(%arg0: i32) -> (i32, i32) {
    %c0_i32 = arith.constant 0 : i32
    %c0_i32_0 = arith.constant 0 : i32
    %c0_i32_1 = arith.constant 0 : i32
    return %c0_i32, %c0_i32_0 : i32, i32
  }
  func.func @transform_5(%arg0: i32) -> (i32, i32, i32) {
    %c0_i32 = arith.constant 0 : i32
    %c0_i32_0 = arith.constant 0 : i32
    %c0_i32_1 = arith.constant 0 : i32
    %c0_i32_2 = arith.constant 0 : i32
    return %c0_i32, %c0_i32_0, %c0_i32_1 : i32, i32, i32
  }
  func.func @transform_6(%arg0: i32) -> (i32, i32) {
    %c0_i32 = arith.constant 0 : i32
    %c0_i32_0 = arith.constant 0 : i32
    %c0_i32_1 = arith.constant 0 : i32
    return %c0_i32, %c0_i32_0 : i32, i32
  }
  func.func @transform_7(%arg0: i32) -> (i32, i32, i32) {
    %c0_i32 = arith.constant 0 : i32
    %c0_i32_0 = arith.constant 0 : i32
    %c0_i32_1 = arith.constant 0 : i32
    return %arg0, %c0_i32, %c0_i32_0 : i32, i32, i32
  }
}

</mosaic_0001>

<bundles_post_ra>
// kernel: dense_layer_forward.1
= control target key start
LH: loop header
LB: loop body
LE: loop exit
PB: predicated region body
PF: predicated region fallthrough
CT: control target
= control target key end

     0   :  { %s2994_s24 = smov 0   ;;  %s3532_s0 = inlined_call_operand.vmem [shape: f32[2,32,256], index: 0, kind: input, shape index: {}]   ;;  %s3533_s1 = inlined_call_operand.vmem [shape: f32[32,32], index: 1, kind: input, shape index: {}]   ;;  %s3534_s2 = inlined_call_operand.vmem [shape: f32[32,1], index: 2, kind: input, shape index: {}]   ;;  %s3535_s3 = inlined_call_operand.vmem [shape: f32[9,16,32], index: 3, kind: input, shape index: {}]   ;;  %s3536_s4 = inlined_call_operand.vmem [shape: f32[16,1], index: 4, kind: input, shape index: {}]   ;;  %s3537_s5 = inlined_call_operand.vmem [shape: f32[9,8,8], index: 5, kind: input, shape index: {}]   ;;  %s3538_s6 = inlined_call_operand.vmem [shape: f32[8,1], index: 6, kind: input, shape index: {}]   ;;  %s3539_s7 = inlined_call_operand.vmem [shape: f32[2,48,256], index: 7, kind: output, shape index: {}]  }
   0x1 LB: > { %s2458_s25 = sadd.s32 4294967295, %s2942_s24   ;;  %p2462_p0 = scmp.ge.s32.totalorder %s2942_s24, 1  ;;  %s2942_s24 = sphi %s2994_s24, %s17_s24  }
   0x2   : > { %p237_p1 = scmp.lt.s32.totalorder %s2942_s24, 3 }
   0x4   : > { %p238_p2 = pnand %p2462_p0, %p237_p1 }
   0x5   : > { %p269_p3 = scmp.lt.s32.totalorder (!%p238_p2), %s2458_s25, 1  ;;  %v2944_v0 = vmov (!%p238_p2), 0.0   ;;  %v330_v1 = vld [vmem:[%s3534_s2] sm:$0xff] (!%p238_p2)  ;;  %v2945_v2 = vmov (!%p238_p2), 0   ;;  %v332_v3 = vld [vmem:[%s3534_s2 + $0x10] sm:$0xff] (!%p238_p2)  ;;  %v331_v4 = vld [vmem:[%s3534_s2 + $0x8] sm:$0xff] (!%p238_p2)  ;;  %v295_v63 = vlaneseq (!%p238_p2) }
   0x6   : > { %241 = sbr.rel (%p238_p2) target bundleno = 1061 (0x425), region = 48  ;;  %431 = vmatprep.mubr.f32.mxu0 (!%p238_p2), %v2944_v0  ;;  %708 = vmatprep.mubr.f32.mxu1 (!%p238_p2), %v2944_v0  ;;  %v333_v5 = vld [vmem:[%s3534_s2 + $0x18] sm:$0xff] (!%p238_p2)  ;;  %v326_v18 = vld [vmem:[%s3533_s1] sm:$0xff] (!%p238_p2)  ;;  %vm354_vm0 = vcmask (!%p238_p2), 261120   ;;  %v327_v19 = vld [vmem:[%s3533_s1 + $0x8] sm:$0xff] (!%p238_p2)  ;;  %s2946_s28 = smov (!%p238_p2), 17  }
   0x7   : > { %2774 = vset.pattern.permute.xlu0 (!%p238_p2), %v2945_v2  ;;  %2775 = vset.pattern.permute.xlu1 (!%p238_p2), %v2945_v2  ;;  %v328_v20 = vld [vmem:[%s3533_s1 + $0x10] sm:$0xff] (!%p238_p2)  ;;  %v329_v21 = vld [vmem:[%s3533_s1 + $0x18] sm:$0xff] (!%p238_p2)  ;;  %s2947_s29 = smov (!%p238_p2), 15   ;;  %s2950_s9 = smov (!%p238_p2), 113   ;;  %v1594_v62 = vld [vmem:[%s3536_s4 + $0x8] sm:$0xff] (!%p238_p2)  ;;  %vm488_vm1 = vcmask (!%p238_p2), 138240  }
   0x8   : > { %336 = vperm.xlu0 (!%p238_p2), %2774, %v330_v1   ;;  %346 = vperm.xlu1 (!%p238_p2), %2775, %v332_v3   ;;  %s2951_s10 = smov (!%p238_p2), 112   ;;  %s2952_s11 = smov (!%p238_p2), 16   ;;  %v296_v1 = vand.u32 (!%p238_p2), 127, %v295_v63  ;;  %vm737_vm6 = vcmask (!%p238_p2), 121856   ;;  %vm3542_vm11 = vcmask (!%p238_p2), 7168   ;;  %vm3541_vm12 = vcmask (!%p238_p2), 1039360  }
   0x9   : > { %s2953_s12 = smov (!%p238_p2), 111   ;;  %vm3540_vm13 = vcmask (!%p238_p2), 924672   ;;  %vm535_vm14 = vcmask (!%p238_p2), 130048  }
   0xa   : > { %v297_v2 = vadd.s32 (!%p238_p2), 128, %v296_v1  ;;  %vm3313_vm15 = vmneg (!%p238_p2), %vm535_vm14 }
   0xc   : > { %341 = vperm.xlu0 (!%p238_p2), %2774, %v331_v4   ;;  %351 = vperm.xlu1 (!%p238_p2), %2775, %v333_v5   ;;  %v309_v4 = vand.u32 (!%p238_p2), 15, %v297_v2  ;;  %v302_v5 = vand.u32 (!%p238_p2), 15, %v296_v1 }
   0xd   : > { %s3570_s25 = smov (!%p269_p3, %s2458_s25), 1 }
   0xe   : > { %s2598_s30 = sshll.u32 %s3570_s25, 6  ;;  %s2755_s8 = smul.u32 96, %s3570_s25  ;;  %vm3127_vm2 = vcmp.ne.s32.totalorder %v309_v4, 0  ;;  %vm3131_vm3 = vcmp.ne.s32.totalorder %v302_v5, 0  ;;  %vm3161_vm7 = vcmp.ne.s32.totalorder %v309_v4, 15  ;;  %vm3165_vm8 = vcmp.ne.s32.totalorder %v302_v5, 15 }
   0xf   : > { %s273_s15 = scalar_lea.vmem %s3532_s0, %s2598_s30  ;;  %s2948_s30 = smov 1   ;;  %vm3142_vm4 = vmpackc.low %vm3127_vm2, %vm3127_vm2 }
  0x10   : > { %s3022_s18 = scalar_lea.vmem %s3539_s7, %s2755_s8  ;;  %v280_v6 = vld [vmem:[%s273_s15 + $0x8] sm:$0xff]  ;;  %v282_v7 = vld [vmem:[%s273_s15 + $0x18] sm:$0xff]  ;;  %v279_v8 = vld [vmem:[%s273_s15] sm:$0xff]  ;;  %s2949_s8 = smov 127  }
  0x11   : > { %288 = vst [vmem:[%s3022_s18 + $0x8] sm:$0xff] %v280_v6  ;;  %290 = vst [vmem:[%s3022_s18 + $0x18] sm:$0xff] %v282_v7  ;;  %v2599_v9 = vpack.c.bf16 %v282_v7, %v280_v6  ;;  %v281_v10 = vld [vmem:[%s273_s15 + $0x10] sm:$0xff]  ;;  %v284_v11 = vld [vmem:[%s273_s15 + $0x28] sm:$0xff] }
  0x12   : > { %287 = vst [vmem:[%s3022_s18] sm:$0xff] %v279_v8  ;;  %v286_v12 = vld [vmem:[%s273_s15 + $0x38] sm:$0xff]  ;;  %289 = vst [vmem:[%s3022_s18 + $0x10] sm:$0xff] %v281_v10  ;;  %v2601_v13 = vpack.c.bf16 %v281_v10, %v279_v8  ;;  %v283_v15 = vld [vmem:[%s273_s15 + $0x20] sm:$0xff] }
  0x13   : > { %292 = vst [vmem:[%s3022_s18 + $0x28] sm:$0xff] %v284_v11  ;;  %294 = vst [vmem:[%s3022_s18 + $0x38] sm:$0xff] %v286_v12  ;;  %v2603_v14 = vpack.c.bf16 %v286_v12, %v284_v11  ;;  %v285_v16 = vld [vmem:[%s273_s15 + $0x30] sm:$0xff]  ;;  %2600 = vmatprep.subr.bf16.mxu0 %v2599_v9 }
  0x14   : > { %291 = vst [vmem:[%s3022_s18 + $0x20] sm:$0xff] %v283_v15  ;;  %293 = vst [vmem:[%s3022_s18 + $0x30] sm:$0xff] %v285_v16  ;;  %2602 = vmatpush1.bf16.msra.mxu0 %v2601_v13  ;;  %v2605_v17 = vpack.c.bf16 %v285_v16, %v283_v15 }
  0x15   : > { %2604 = vmatprep.subr.bf16.mxu0 %v2603_v14  ;;  %vm3149_vm5 = vmpackc.low %vm3131_vm3, %vm3131_vm3 }
  0x16   : > { %vm3183_vm9 = vmpackc.low %vm3161_vm7, %vm3161_vm7 }
  0x17   : > { %vm3190_vm10 = vmpackc.low %vm3165_vm8, %vm3165_vm8 }
  0x18   : > { %2606 = vmatpush1.bf16.msra.mxu0 %v2605_v17 }
  0x1b   : > { %2466 = vmatmul.mubr.msk.f32.vlgmr.msra.gmra.mrb[0].mxu0 %vm354_vm0, %v326_v18 }
  0x1c   : > { %437 = vmatprep.mubr.f32.mxu0 %v2944_v0 }
  0x1f   : > { %2467 = vmatmul.mubr.msk.f32.gmra.mrb[2].mxu0 %vm354_vm0, %v327_v19 }
  0x20   : > { %443 = vmatprep.mubr.f32.mxu0 %v2944_v0 }
  0x23   : > { %2468 = vmatmul.mubr.msk.f32.gmra.mrb[4].mxu0 %vm354_vm0, %v328_v20 }
  0x24   : > { %449 = vmatprep.mubr.f32.mxu0 %v2944_v0 }
  0x27   : > { %2469 = vmatmul.mubr.msk.f32.gmra.mrb[6].mxu0 %vm354_vm0, %v329_v21 }
  0x28   : > { %625 = vmatprep.mubr.f32.mxu0 %v2944_v0 }
  0x87   : > { %v337_v22 = vpop.permute.xlu0 %336  ;;  %v347_v33 = vpop.permute.xlu1 %346 }
  0x8b   : > { %v342_v27 = vpop.permute.xlu0 %341  ;;  %v352_v46 = vpop.permute.xlu1 %351 }
  0xee   : > { %v433_v23 = vpop.f32.mrb[0].mxu0 }
  0xef   : > { %v434_v24 = vadd.f32 %v433_v23, %v337_v22  ;;  %v435_v25 = vpop.f32.mrb[1].mxu0 }
  0xf0   : > { %v436_v26 = vadd.f32 %v435_v25, %v337_v22 }
  0xf1   : > { %v3052_v28 = vmax.f32 %v434_v24, 0.0 }
  0xf2   : > { %v3054_v29 = vmax.f32 %v436_v26, 0.0  ;;  %v439_v30 = vpop.f32.mrb[2].mxu0 }
  0xf3   : > { %v440_v31 = vadd.f32 %v439_v30, %v342_v27  ;;  %v441_v32 = vpop.f32.mrb[3].mxu0 }
  0xf4   : > { %v442_v34 = vadd.f32 %v441_v32, %v342_v27  ;;  %v2776_v35 = vpack.i.bf16 %v3054_v29, %v3052_v28 }
  0xf5   : > { %v3058_v36 = vmax.f32 %v440_v31, 0.0 }
  0xf6   : > { %v3060_v37 = vmax.f32 %v442_v34, 0.0  ;;  %v445_v38 = vpop.f32.mrb[4].mxu0  ;;  %2777 = vrot.lane.b32.xlu0 %v2776_v35, %s2946_s28 }
  0xf7   : > { %v446_v39 = vadd.f32 %v445_v38, %v347_v33  ;;  %v447_v40 = vpop.f32.mrb[5].mxu0  ;;  %v2841_v41 = vpack.i.bf16 %v3058_v36, %v3052_v28  ;;  %v2655_v52 = vpack.c.bf16 %v3058_v36, %v3052_v28 }
  0xf8   : > { %v448_v42 = vadd.f32 %v447_v40, %v347_v33  ;;  %v2781_v43 = vpack.i.bf16 %v3060_v37, %v3058_v36  ;;  %v2836_v45 = vpack.i.bf16 %v3060_v37, %v3054_v29  ;;  %v2653_v51 = vpack.c.bf16 %v3060_v37, %v3054_v29 }
  0xf9   : > { %v3067_v44 = vmax.f32 %v446_v39, 0.0 }
  0xfa   : > { %v3071_v47 = vmax.f32 %v448_v42, 0.0  ;;  %v451_v48 = vpop.f32.mrb[6].mxu0  ;;  %2782 = vrot.lane.b32.xlu1 %v2781_v43, %s2946_s28  ;;  %v2592_v42 = vld [vmem:[%s3537_s5 + $0x40] sm:$0xff] }
  0xfb   : > { %v452_v49 = vadd.f32 %v451_v48, %v352_v46  ;;  %v453_v50 = vpop.f32.mrb[7].mxu0 }
  0xfc   : > { %v454_v53 = vadd.f32 %v453_v50, %v352_v46  ;;  %v2786_v54 = vpack.i.bf16 %v3071_v47, %v3067_v44 }
  0xfd   : > { %v3080_v55 = vmax.f32 %v452_v49, 0.0 }
  0xfe   : > { %v3082_v56 = vmax.f32 %v454_v53, 0.0  ;;  %2787 = vrot.lane.b32.xlu0 %v2786_v54, %s2946_s28 }
  0xff   : > { %v2846_v57 = vpack.i.bf16 %v3080_v55, %v3067_v44  ;;  %v2659_v61 = vpack.c.bf16 %v3080_v55, %v3067_v44 }
 0x100   : > { %v2796_v58 = vpack.i.bf16 %v3082_v56, %v3080_v55  ;;  %v2876_v59 = vpack.i.bf16 %v3082_v56, %v3071_v47  ;;  %v2657_v60 = vpack.c.bf16 %v3082_v56, %v3071_v47  ;;  %v2516_v47 = vld [vmem:[%s3535_s3 + $0x40] sm:$0xff] }
 0x102   : > { %2797 = vrot.lane.b32.xlu1 %v2796_v58, %s2946_s28  ;;  %2792 = vrot.lane.b32.xlu0 %v2776_v35, %s2947_s29 }
 0x106   : > { %2802 = vrot.lane.b32.xlu1 %v2781_v43, %s2947_s29  ;;  %2807 = vrot.lane.b32.xlu0 %v2786_v54, %s2947_s29 }
 0x10a   : > { %2817 = vrot.lane.b32.xlu1 %v2796_v58, %s2947_s29  ;;  %2812 = vrot.lane.b32.xlu0 %v2776_v35, %s2948_s30 }
 0x10e   : > { %2822 = vrot.lane.b32.xlu1 %v2781_v43, %s2948_s30  ;;  %2827 = vrot.lane.b32.xlu0 %v2786_v54, %s2948_s30 }
 0x112   : > { %2832 = vrot.lane.b32.xlu1 %v2796_v58, %s2948_s30  ;;  %2837 = vrot.lane.b32.xlu0 %v2836_v45, %s2949_s8 }
 0x116   : > { %2842 = vrot.lane.b32.xlu1 %v2841_v41, %s2949_s8  ;;  %2852 = vrot.lane.b32.xlu0 %v2836_v45, %s2950_s9 }
 0x11a   : > { %2847 = vrot.lane.b32.xlu1 %v2846_v57, %s2949_s8  ;;  %2867 = vrot.lane.b32.xlu0 %v2776_v35, %s2951_s10 }
 0x11e   : > { %2857 = vrot.lane.b32.xlu1 %v2841_v41, %s2950_s9  ;;  %2877 = vrot.lane.b32.xlu0 %v2876_v59, %s2949_s8 }
 0x122   : > { %2862 = vrot.lane.b32.xlu1 %v2846_v57, %s2950_s9  ;;  %2882 = vrot.lane.b32.xlu0 %v2786_v54, %s2951_s10 }
 0x126   : > { %2872 = vrot.lane.b32.xlu1 %v2781_v43, %s2951_s10  ;;  %2887 = vrot.lane.b32.xlu0 %v2876_v59, %s2950_s9 }
 0x12a   : > { %2897 = vrot.lane.b32.xlu1 %v2781_v43, %s2952_s11  ;;  %2892 = vrot.lane.b32.xlu0 %v2776_v35, %s2952_s11 }
 0x12e   : > { %2907 = vrot.lane.b32.xlu1 %v2841_v41, %s2953_s12  ;;  %2902 = vrot.lane.b32.xlu0 %v2836_v45, %s2953_s12 }
 0x132   : > { %2917 = vrot.lane.b32.xlu1 %v2796_v58, %s2951_s10  ;;  %2912 = vrot.lane.b32.xlu0 %v2786_v54, %s2952_s11 }
 0x136   : > { %2922 = vrot.lane.b32.xlu1 %v2796_v58, %s2952_s11  ;;  %2927 = vrot.lane.b32.xlu0 %v2876_v59, %s2953_s12  ;;  %v517_v58 = vld [vmem:[%s3535_s3] sm:$0xff]  ;;  %v2471_v59 = vld [vmem:[%s3535_s3 + $0x18] sm:$0xff] }
 0x13a   : > { %2932 = vrot.lane.b32.xlu1 %v2846_v57, %s2953_s12  ;;  %1602 = vperm.xlu0 %2774, %v1594_v62  }
 0x168   : > { %v2778_v3 = vpop.permute.xlu0 %2777 }
 0x169   : > { %v2780_v6 = vunpack.i.h.bf16 %v2778_v3  ;;  %v2779_v7 = vunpack.i.l.bf16 %v2778_v3  ;;  %v2553_v3 = vld [vmem:[%s3535_s3 + $0x88] sm:$0xff] }
 0x16b   : > { %v501_v13 = vsel %vm488_vm1, 0.0, %v2779_v7  ;;  %v489_v15 = vsel %vm488_vm1, %v2779_v7, %v2780_v6 }
 0x16c   : > { %v2783_v8 = vpop.permute.xlu1 %2782 }
 0x16d   : > { %v2785_v10 = vunpack.i.h.bf16 %v2783_v8  ;;  %v2784_v11 = vunpack.i.l.bf16 %v2783_v8 }
 0x16f   : > { %v502_v14 = vsel %vm488_vm1, 0.0, %v2784_v11  ;;  %v490_v16 = vsel %vm488_vm1, %v2784_v11, %v2785_v10 }
 0x170   : > { %v2788_v18 = vpop.permute.xlu0 %2787  ;;  %v2617_v19 = vpack.c.bf16 %v490_v16, %v489_v15  ;;  %v2620_v20 = vpack.c.bf16 %v502_v14, %v501_v13  ;;  %v518_v14 = vld [vmem:[%s3535_s3 + $0x8] sm:$0xff] }
 0x171   : > { %v2790_v22 = vunpack.i.h.bf16 %v2788_v18  ;;  %v2789_v23 = vunpack.i.l.bf16 %v2788_v18 }
 0x172   : > { %2619 = vmatprep.subr.msk.bf16.mxu1 %vm3142_vm4, %v2617_v19 }
 0x173   : > { %2622 = vmatpush1.bf16.msk.msra.mxu1 %vm3149_vm5, %v2620_v20  ;;  %v491_v32 = vsel %vm488_vm1, %v2789_v23, %v2790_v22  ;;  %v503_v33 = vsel %vm488_vm1, 0.0, %v2789_v23 }
 0x174   : > { %v2798_v24 = vpop.permute.xlu1 %2797  ;;  %v2793_v25 = vpop.permute.xlu0 %2792 }
 0x175   : > { %v2800_v26 = vunpack.i.h.bf16 %v2798_v24  ;;  %v2799_v27 = vunpack.i.l.bf16 %v2798_v24  ;;  %v2795_v30 = vunpack.i.h.bf16 %v2793_v25  ;;  %v2794_v31 = vunpack.i.l.bf16 %v2793_v25 }
 0x177   : > { %v492_v34 = vsel %vm488_vm1, %v2799_v27, %v2800_v26  ;;  %v504_v35 = vsel %vm488_vm1, 0.0, %v2799_v27  ;;  %v738_v48 = vsel %vm737_vm6, %v2794_v31, %v2795_v30  ;;  %v750_v49 = vsel %vm737_vm6, 0.0, %v2794_v31  ;;  %v2492_v31 = vld [vmem:[%s3535_s3 + $0x20] sm:$0xff] }
 0x178   : > { %v2623_v38 = vpack.c.bf16 %v492_v34, %v491_v32  ;;  %v2626_v39 = vpack.c.bf16 %v504_v35, %v503_v33  ;;  %v2803_v40 = vpop.permute.xlu1 %2802  ;;  %v2808_v41 = vpop.permute.xlu0 %2807 }
 0x179   : > { %v2805_v43 = vunpack.i.h.bf16 %v2803_v40  ;;  %v2804_v45 = vunpack.i.l.bf16 %v2803_v40  ;;  %v2810_v54 = vunpack.i.h.bf16 %v2808_v41  ;;  %v2809_v57 = vunpack.i.l.bf16 %v2808_v41 }
 0x17a   : > { %2625 = vmatprep.subr.msk.bf16.mxu1 %vm3142_vm4, %v2623_v38 }
 0x17b   : > { %v739_v50 = vsel %vm737_vm6, %v2804_v45, %v2805_v43  ;;  %v751_v53 = vsel %vm737_vm6, 0.0, %v2804_v45  ;;  %2628 = vmatpush1.bf16.msk.msra.mxu1 %vm3149_vm5, %v2626_v39  ;;  %v740_v8 = vsel %vm737_vm6, %v2809_v57, %v2810_v54  ;;  %v752_v10 = vsel %vm737_vm6, 0.0, %v2809_v57 }
 0x17c   : > { %v2629_v62 = vpack.c.bf16 %v739_v50, %v738_v48  ;;  %v2632_v63 = vpack.c.bf16 %v751_v53, %v750_v49  ;;  %v2818_v1 = vpop.permute.xlu1 %2817  ;;  %v2813_v2 = vpop.permute.xlu0 %2812  ;;  %v2493_v48 = vld [vmem:[%s3535_s3 + $0x28] sm:$0xff] }
 0x17d   : > { %v2820_v4 = vunpack.i.h.bf16 %v2818_v1  ;;  %v2819_v5 = vunpack.i.l.bf16 %v2818_v1  ;;  %v2815_v6 = vunpack.i.h.bf16 %v2813_v2  ;;  %v2814_v7 = vunpack.i.l.bf16 %v2813_v2 }
 0x17e   : > { %2490 = vmatmul.mubr.msk.f32.vlgmr.msra.gmra.mrb[0].mxu1 %vm354_vm0, %v517_v58  ;;  %2631 = vmatprep.subr.msk.bf16.mxu1 %vm3183_vm9, %v2629_v62  ;;  %v2504_v62 = vld [vmem:[%s3535_s3 + $0x30] sm:$0xff] }
 0x17f   : > { %v741_v11 = vsel %vm737_vm6, %v2819_v5, %v2820_v4  ;;  %v753_v13 = vsel %vm737_vm6, 0.0, %v2819_v5  ;;  %2634 = vmatpush1.bf16.msk.msra.mxu1 %vm3190_vm10, %v2632_v63  ;;  %714 = vmatprep.mubr.f32.mxu1 %v2944_v0  ;;  %v873_v23 = vsel %vm3542_vm11, %v2814_v7, %v2815_v6  ;;  %v885_v24 = vsel %vm3542_vm11, 0.0, %v2814_v7  ;;  %v2505_v7 = vld [vmem:[%s3535_s3 + $0x38] sm:$0xff] }
 0x180   : > { %v2635_v15 = vpack.c.bf16 %v741_v11, %v740_v8  ;;  %v2638_v16 = vpack.c.bf16 %v753_v13, %v752_v10  ;;  %v2823_v18 = vpop.permute.xlu1 %2822  ;;  %v2828_v19 = vpop.permute.xlu0 %2827 }
 0x181   : > { %v2825_v20 = vunpack.i.h.bf16 %v2823_v18  ;;  %v2824_v22 = vunpack.i.l.bf16 %v2823_v18  ;;  %v2830_v27 = vunpack.i.h.bf16 %v2828_v19  ;;  %v2829_v30 = vunpack.i.l.bf16 %v2828_v19 }
 0x182   : > { %2491 = vmatmul.mubr.msk.f32.gmra.mrb[2].mxu1 %vm354_vm0, %v518_v14  ;;  %2637 = vmatprep.subr.msk.bf16.mxu1 %vm3183_vm9, %v2635_v15 }
 0x183   : > { %v874_v25 = vsel %vm3542_vm11, %v2824_v22, %v2825_v20  ;;  %v886_v26 = vsel %vm3542_vm11, 0.0, %v2824_v22  ;;  %2640 = vmatpush1.bf16.msk.msra.mxu1 %vm3190_vm10, %v2638_v16  ;;  %839 = vmatprep.mubr.f32.mxu1 %v2944_v0  ;;  %v875_v40 = vsel %vm3542_vm11, %v2829_v30, %v2830_v27  ;;  %v887_v41 = vsel %vm3542_vm11, 0.0, %v2829_v30 }
 0x184   : > { %v2641_v32 = vpack.c.bf16 %v874_v25, %v873_v23  ;;  %v2644_v33 = vpack.c.bf16 %v886_v26, %v885_v24  ;;  %v2833_v34 = vpop.permute.xlu1 %2832  ;;  %v2838_v35 = vpop.permute.xlu0 %2837  ;;  %v2517_v24 = vld [vmem:[%s3535_s3 + $0x48] sm:$0xff] }
 0x185   : > { %v2835_v38 = vunpack.i.h.bf16 %v2833_v34  ;;  %v2834_v39 = vunpack.i.l.bf16 %v2833_v34  ;;  %v2840_v57 = vunpack.i.h.bf16 %v2838_v35  ;;  %v2839_v58 = vunpack.i.l.bf16 %v2838_v35 }
 0x186   : > { %2502 = vmatmul.mubr.msk.f32.vlgmr.msra.gmra.mrb[0].mxu1 %vm354_vm0, %v2492_v31  ;;  %2643 = vmatprep.subr.msk.bf16.mxu1 %vm3142_vm4, %v2641_v32 }
 0x187   : > { %v876_v43 = vsel %vm3542_vm11, %v2834_v39, %v2835_v38  ;;  %v888_v45 = vsel %vm3542_vm11, 0.0, %v2834_v39  ;;  %2646 = vmatpush1.bf16.msk.msra.mxu1 %vm3149_vm5, %v2644_v33  ;;  %845 = vmatprep.mubr.f32.mxu1 %v2944_v0  ;;  %v1107_v5 = vsel %vm3541_vm12, %v2840_v57, 0.0  ;;  %v1106_v6 = vsel %vm3541_vm12, %v2839_v58, 0.0  ;;  %v2520_v39 = vld [vmem:[%s3535_s3 + $0x50] sm:$0xff] }
 0x188   : > { %v2647_v49 = vpack.c.bf16 %v876_v43, %v875_v40  ;;  %v2650_v50 = vpack.c.bf16 %v888_v45, %v887_v41  ;;  %v2843_v53 = vpop.permute.xlu1 %2842  ;;  %v2853_v54 = vpop.permute.xlu0 %2852  ;;  %v2661_v10 = vpack.c.bf16 %v1107_v5, %v1106_v6  ;;  %v2521_v5 = vld [vmem:[%s3535_s3 + $0x58] sm:$0xff]  ;;  %vm1478_vm11 = vcmask 908288  }
 0x189   : > { %v2845_v2 = vunpack.i.h.bf16 %v2843_v53  ;;  %v2844_v4 = vunpack.i.l.bf16 %v2843_v53  ;;  %v2855_v36 = vunpack.i.h.bf16 %v2853_v54 }
 0x18a   : > { %2503 = vmatmul.mubr.msk.f32.gmra.mrb[2].mxu1 %vm354_vm0, %v2493_v48  ;;  %2649 = vmatprep.subr.msk.bf16.mxu1 %vm3142_vm4, %v2647_v49 }
 0x18b   : > { %2652 = vmatpush1.bf16.msk.msra.mxu1 %vm3149_vm5, %v2650_v50  ;;  %970 = vmatprep.mubr.f32.mxu1 %v2944_v0  ;;  %v1094_v11 = vsel %vm3541_vm12, %v2844_v4, %v2839_v58  ;;  %v1095_v28 = vsel %vm3541_vm12, %v2845_v2, %v2840_v57  ;;  %v1238_v22 = vsel %vm3540_vm13, %v2855_v36, 0.0 }
 0x18c   : > { %v2848_v63 = vpop.permute.xlu1 %2847  ;;  %v3242_v1 = vpop.permute.xlu0 %2867  ;;  %2654 = vmatprep.subr.bf16.mxu1 %v2653_v51  ;;  %v2664_v19 = vpack.c.bf16 %v1095_v28, %v1094_v11 }
 0x18d   : > { %v2850_v56 = vunpack.i.h.bf16 %v2848_v63 }
 0x18e   : > { %2514 = vmatmul.mubr.msk.f32.vlgmr.msra.gmra.mrb[0].mxu1 %vm354_vm0, %v2504_v62 }
 0x18f   : > { %2656 = vmatpush1.bf16.msra.mxu1 %v2655_v52  ;;  %976 = vmatprep.mubr.f32.mxu1 %v2944_v0  ;;  %v2854_v52 = vunpack.i.l.bf16 %v2853_v54 }
 0x190   : > { %v2858_v29 = vpop.permute.xlu1 %2857  ;;  %v2878_v37 = vpop.permute.xlu0 %2877  ;;  %2658 = vmatprep.subr.bf16.mxu1 %v2657_v60  ;;  %v2849_v60 = vunpack.i.l.bf16 %v2848_v63 }
 0x191   : > { %v2880_v51 = vunpack.i.h.bf16 %v2878_v37  ;;  %v2879_v8 = vunpack.i.l.bf16 %v2878_v37  ;;  %v2859_v14 = vunpack.i.l.bf16 %v2858_v29  ;;  %v2860_v44 = vunpack.i.h.bf16 %v2858_v29 }
 0x192   : > { %2515 = vmatmul.mubr.msk.f32.gmra.mrb[2].mxu1 %vm354_vm0, %v2505_v7  ;;  %v1237_v23 = vsel %vm3540_vm13, %v2854_v52, 0.0  ;;  %v2870_v7 = vunpack.i.h.bf16 %v3242_v1  ;;  %v2869_v29 = vunpack.i.l.bf16 %v3242_v1 }
 0x193   : > { %v1109_v13 = vsel %vm3541_vm12, %v2880_v51, 0.0  ;;  %2660 = vmatpush1.bf16.msra.mxu1 %v2659_v61  ;;  %1060 = vmatprep.mubr.f32.mxu1 %v2944_v0  ;;  %v1108_v15 = vsel %vm3541_vm12, %v2879_v8, 0.0  ;;  %v1097_v55 = vsel %vm3541_vm12, %v2850_v56, %v2880_v51  ;;  %v1096_v61 = vsel %vm3541_vm12, %v2849_v60, %v2879_v8  ;;  %v2532_v60 = vld [vmem:[%s3535_s3 + $0x60] sm:$0xff] }
 0x194   : > { %v2863_v16 = vpop.permute.xlu1 %2862  ;;  %v3272_v18 = vpop.permute.xlu0 %2882  ;;  %2663 = vmatprep.subr.msk.bf16.mxu1 %vm3183_vm9, %v2661_v10  ;;  %v2667_v20 = vpack.c.bf16 %v1109_v13, %v1108_v15  ;;  %v1225_v25 = vsel %vm3540_vm13, %v2859_v14, %v2854_v52  ;;  %v1226_v30 = vsel %vm3540_vm13, %v2860_v44, %v2855_v36  ;;  %v2670_v31 = vpack.c.bf16 %v1097_v55, %v1096_v61 }
 0x195   : > { %v2673_v34 = vpack.c.bf16 %v1238_v22, %v1237_v23  ;;  %v2865_v35 = vunpack.i.h.bf16 %v2863_v16  ;;  %v2676_v40 = vpack.c.bf16 %v1226_v30, %v1225_v25  ;;  %v2864_v41 = vunpack.i.l.bf16 %v2863_v16 }
 0x196   : > { %2518 = vmatmul.mubr.msk.f32.vlgmr.msra.gmra.mrb[0].mxu1 %vm354_vm0, %v2516_v47  ;;  %v2885_v10 = vunpack.i.h.bf16 %v3272_v18  ;;  %v2884_v11 = vunpack.i.l.bf16 %v3272_v18 }
 0x197   : > { %2666 = vmatpush1.bf16.msk.msra.mxu1 %vm3190_vm10, %v2664_v19  ;;  %1066 = vmatprep.mubr.f32.mxu1 %v2944_v0 }
 0x198   : > { %v2873_v26 = vpop.permute.xlu1 %2872  ;;  %v2888_v27 = vpop.permute.xlu0 %2887  ;;  %2669 = vmatprep.subr.msk.bf16.mxu1 %vm3183_vm9, %v2667_v20 }
 0x199   : > { %v2890_v32 = vunpack.i.h.bf16 %v2888_v27  ;;  %v2889_v33 = vunpack.i.l.bf16 %v2888_v27  ;;  %v2875_v43 = vunpack.i.h.bf16 %v2873_v26  ;;  %v2874_v50 = vunpack.i.l.bf16 %v2873_v26  ;;  %v2533_v27 = vld [vmem:[%s3535_s3 + $0x68] sm:$0xff] }
 0x19a   : > { %2519 = vmatmul.mubr.msk.f32.gmra.mrb[2].mxu1 %vm354_vm0, %v2517_v24 }
 0x19b   : > { %v1240_v38 = vsel %vm3540_vm13, %v2890_v32, 0.0  ;;  %2672 = vmatpush1.bf16.msk.msra.mxu1 %vm3190_vm10, %v2670_v31  ;;  %1191 = vmatprep.mubr.f32.mxu1 %v2944_v0  ;;  %v1239_v45 = vsel %vm3540_vm13, %v2889_v33, 0.0  ;;  %v1228_v53 = vsel %vm3540_vm13, %v2865_v35, %v2890_v32  ;;  %v1227_v58 = vsel %vm3540_vm13, %v2864_v41, %v2889_v33 }
 0x19c   : > { %v2898_v48 = vpop.permute.xlu1 %2897  ;;  %v2893_v49 = vpop.permute.xlu0 %2892  ;;  %2675 = vmatprep.subr.msk.bf16.mxu1 %vm3142_vm4, %v2673_v34  ;;  %v2679_v62 = vpack.c.bf16 %v1240_v38, %v1239_v45  ;;  %vm1355_vm13 = vcmask 916480   ;;  %v2682_v36 = vpack.c.bf16 %v1228_v53, %v1227_v58  ;;  %v2685_v1 = vpack.c.bf16 %v2875_v43, %v2870_v7 }
 0x19d   : > { %v2900_v54 = vunpack.i.h.bf16 %v2898_v48  ;;  %v2899_v57 = vunpack.i.l.bf16 %v2898_v48  ;;  %v2895_v63 = vunpack.i.h.bf16 %v2893_v49  ;;  %v2894_v2 = vunpack.i.l.bf16 %v2893_v49  ;;  %vm3327_vm12 = vmpackc.low %vm1355_vm13, %vm1355_vm13 }
 0x19e   : > { %2530 = vmatmul.mubr.msk.f32.vlgmr.msra.gmra.mrb[0].mxu1 %vm354_vm0, %v2520_v39  ;;  %v1357_v28 = vsel %vm1355_vm13, %v2874_v50, %v2875_v43  ;;  %v1356_v14 = vsel %vm1355_vm13, %v2869_v29, %v2870_v7  ;;  %v1358_v18 = vsel %vm1355_vm13, %v2884_v11, %v2885_v10  ;;  %v2544_v50 = vld [vmem:[%s3535_s3 + $0x70] sm:$0xff]  ;;  %v2545_v7 = vld [vmem:[%s3535_s3 + $0x78] sm:$0xff] }
 0x19f   : > { %2678 = vmatpush1.bf16.msk.msra.mxu1 %vm3149_vm5, %v2676_v40  ;;  %1197 = vmatprep.mubr.f32.mxu1 %v2944_v0  ;;  %v537_v4 = vsel %vm535_vm14, %v2899_v57, %v2900_v54  ;;  %v536_v8 = vsel %vm535_vm14, %v2894_v2, %v2895_v63  ;;  %v2609_v56 = vpack.c.bf16 %v2899_v57, %v2894_v2  ;;  %v2470_v29 = vld [vmem:[%s3535_s3 + $0x10] sm:$0xff] }
 0x1a0   : > { %v2908_v37 = vpop.permute.xlu1 %2907  ;;  %v2903_v51 = vpop.permute.xlu0 %2902  ;;  %2681 = vmatprep.subr.msk.bf16.mxu1 %vm3142_vm4, %v2679_v62  ;;  %v2607_v17 = vpack.c.bf16 %v537_v4, %v536_v8  ;;  %vm2610_vm4 = vmpackc.low %vm3313_vm15, %vm3313_vm15  ;;  %v2688_v19 = vpack.c.bf16 %v1357_v28, %v1356_v14 }
 0x1a1   : > { %v2905_v13 = vunpack.i.h.bf16 %v2903_v51  ;;  %v2904_v47 = vunpack.i.l.bf16 %v2903_v51  ;;  %v2910_v55 = vunpack.i.h.bf16 %v2908_v37  ;;  %v2909_v61 = vunpack.i.l.bf16 %v2908_v37  ;;  %v2552_v51 = vld [vmem:[%s3535_s3 + $0x80] sm:$0xff] }
 0x1a2   : > { %2531 = vmatmul.mubr.msk.f32.gmra.mrb[2].mxu1 %vm354_vm0, %v2521_v5  ;;  %2608 = vmatprep.subr.bf16.mxu0 %v2607_v17 }
 0x1a3   : > { %2684 = vmatpush1.bf16.msk.msra.mxu1 %vm3149_vm5, %v2682_v36  ;;  %1322 = vmatprep.mubr.f32.mxu1 %v2944_v0  ;;  %v1492_v20 = vsel %vm1478_vm11, %v2905_v13, 0.0  ;;  %v1491_v22 = vsel %vm1478_vm11, %v2904_v47, 0.0  ;;  %v1480_v39 = vsel %vm1478_vm11, %v2910_v55, %v2905_v13  ;;  %v1479_v40 = vsel %vm1478_vm11, %v2909_v61, %v2904_v47 }
 0x1a4   : > { %v2918_v15 = vpop.permute.xlu1 %2917  ;;  %v2913_v16 = vpop.permute.xlu0 %2912  ;;  %2687 = vmatprep.subr.msk.bf16.mxu1 %vm3327_vm12, %v2685_v1  ;;  %2611 = vmatpush1.bf16.msk.msra.mxu0 %vm2610_vm4, %v2609_v56  ;;  %v2695_v41 = vpack.c.bf16 %v1492_v20, %v1491_v22  ;;  %v2698_v57 = vpack.c.bf16 %v1480_v39, %v1479_v40  ;;  %v2564_v22 = vld [vmem:[%s3537_s5 + $0x8] sm:$0xff] }
 0x1a5   : > { %v2920_v21 = vunpack.i.h.bf16 %v2918_v15  ;;  %v2919_v44 = vunpack.i.l.bf16 %v2918_v15  ;;  %v2915_v25 = vunpack.i.h.bf16 %v2913_v16  ;;  %v2914_v26 = vunpack.i.l.bf16 %v2913_v16 }
 0x1a6   : > { %2542 = vmatmul.mubr.msk.f32.vlgmr.msra.gmra.mrb[0].mxu1 %vm354_vm0, %v2532_v60 }
 0x1a7   : > { %v1359_v23 = vsel %vm1355_vm13, %v2919_v44, %v2920_v21  ;;  %v2690_v24 = vpack.c.bf16 %v2920_v21, %v2885_v10  ;;  %2689 = vmatpush1.bf16.msra.mxu1 %v2688_v19  ;;  %1328 = vmatprep.mubr.f32.mxu1 %v2944_v0  ;;  %v538_v48 = vsel %vm535_vm14, %v2914_v26, %v2915_v25  ;;  %v1593_v21 = vld [vmem:[%s3536_s4] sm:$0xff] }
 0x1a8   : > { %v2693_v30 = vpack.c.bf16 %v1359_v23, %v1358_v18  ;;  %v2923_v31 = vpop.permute.xlu1 %2922  ;;  %v2928_v32 = vpop.permute.xlu0 %2927  ;;  %v2391_v44 = vld [vmem:[%s3538_s6] sm:$0xff] }
 0x1a9   : > { %v2925_v33 = vunpack.i.h.bf16 %v2923_v31  ;;  %v2924_v34 = vunpack.i.l.bf16 %v2923_v31  ;;  %v2930_v35 = vunpack.i.h.bf16 %v2928_v32  ;;  %v2929_v38 = vunpack.i.l.bf16 %v2928_v32  ;;  %2692 = vmatprep.subr.msk.bf16.mxu1 %vm3327_vm12, %v2690_v24  ;;  %v1627_v31 = vld [vmem:[%s3537_s5] sm:$0xff] }
 0x1aa   : > { %2543 = vmatmul.mubr.msk.f32.gmra.mrb[2].mxu1 %vm354_vm0, %v2533_v27 }
 0x1ab   : > { %v1494_v43 = vsel %vm1478_vm11, %v2930_v35, 0.0  ;;  %v1493_v45 = vsel %vm1478_vm11, %v2929_v38, 0.0  ;;  %2694 = vmatpush1.bf16.msra.mxu1 %v2693_v30  ;;  %1445 = vmatprep.mubr.f32.mxu1 %v2944_v0  ;;  %v539_v49 = vsel %vm535_vm14, %v2924_v34, %v2925_v33  ;;  %v2614_v58 = vpack.c.bf16 %v2924_v34, %v2914_v26 }
 0x1ac   : > { %v2933_v53 = vpop.permute.xlu1 %2932  ;;  %2697 = vmatprep.subr.msk.bf16.mxu1 %vm3183_vm9, %v2695_v41  ;;  %v2612_v54 = vpack.c.bf16 %v539_v49, %v538_v48  ;;  %v2701_v2 = vpack.c.bf16 %v1494_v43, %v1493_v45  ;;  %v2575_v41 = vld [vmem:[%s3537_s5 + $0x18] sm:$0xff]  ;;  %v2579_v49 = vld [vmem:[%s3537_s5 + $0x20] sm:$0xff] }
 0x1ad   : > { %v2935_v62 = vunpack.i.h.bf16 %v2933_v53  ;;  %v2934_v63 = vunpack.i.l.bf16 %v2933_v53 }
 0x1ae   : > { %2613 = vmatprep.subr.bf16.mxu0 %v2612_v54  ;;  %2550 = vmatmul.mubr.msk.f32.vlgmr.msra.gmra.mrb[0].mxu1 %vm354_vm0, %v2544_v50 }
 0x1af   : > { %v1481_v4 = vsel %vm1478_vm11, %v2934_v63, %v2929_v38  ;;  %v1482_v5 = vsel %vm1478_vm11, %v2935_v62, %v2930_v35  ;;  %2616 = vmatpush1.bf16.msk.msra.mxu0 %vm2610_vm4, %v2614_v58  ;;  %2700 = vmatpush1.bf16.msk.msra.mxu1 %vm3190_vm10, %v2698_v57  ;;  %v2571_v38 = vld [vmem:[%s3537_s5 + $0x10] sm:$0xff]  ;;  %v2581_v62 = vld [vmem:[%s3537_s5 + $0x28] sm:$0xff] }
 0x1b0   : > { %v2704_v37 = vpack.c.bf16 %v1482_v5, %v1481_v4  ;;  %2703 = vmatprep.subr.msk.bf16.mxu1 %vm3183_vm9, %v2701_v2  ;;  %1451 = vmatprep.mubr.f32.mxu1 %v2944_v0 }
 0x1b2   : > { %2551 = vmatmul.mubr.msk.f32.gmra.mrb[2].mxu1 %vm354_vm0, %v2545_v7  ;;  %2480 = vmatmul.mubr.msk.f32.vlgmr.msra.gmra.mrb[8].mxu0 %vm354_vm0, %v2470_v29 }
 0x1b3   : > { %2706 = vmatpush1.bf16.msk.msra.mxu1 %vm3190_vm10, %v2704_v37  ;;  %1576 = vmatprep.mubr.f32.mxu1 %v2944_v0  ;;  %vm3567_vm10 = vcmask 924672   ;;  %v2585_v37 = vld [vmem:[%s3537_s5 + $0x30] sm:$0xff] }
 0x1b4   : > { %631 = vmatprep.mubr.f32.mxu0 %v2944_v0  ;;  %vm3568_vm12 = vmmov %vm3567_vm10 }
 0x1b6   : > { %2562 = vmatmul.mubr.msk.f32.vlgmr.msra.gmra.mrb[0].mxu1 %vm354_vm0, %v2552_v51  ;;  %2481 = vmatmul.mubr.msk.f32.gmra.mrb[10].mxu0 %vm354_vm0, %v2471_v59 }
 0x1b7   : > { %1582 = vmatprep.mubr.f32.mxu1 %v2944_v0  ;;  %1706 = vmatprep.mubr.f32.mxu0 %v2944_v0 }
 0x1b9   : > { %v1603_v60 = vpop.permute.xlu0 %1602 }
 0x1ba   : > { %2563 = vmatmul.mubr.msk.f32.gmra.mrb[2].mxu1 %vm354_vm0, %v2553_v3  ;;  %vm1638_vm0 = vcmask 64512   ;;  %v2589_v3 = vld [vmem:[%s3537_s5 + $0x38] sm:$0xff] }
 0x285   : > { %v627_v8 = vpop.f32.mrb[8].mxu0 }
 0x286   : > { %v629_v10 = vpop.f32.mrb[9].mxu0 }
 0x289   : > { %v1578_v11 = vpop.f32.mrb[0].mxu1  ;;  %v633_v28 = vpop.f32.mrb[10].mxu0 }
 0x28a   : > { %v3412_v36 = vadd.f32 %v1578_v11, %v627_v8  ;;  %v1580_v52 = vpop.f32.mrb[1].mxu1  ;;  %v635_v1 = vpop.f32.mrb[11].mxu0 }
 0x28b   : > { %v3414_v13 = vadd.f32 %v1580_v52, %v629_v10 }
 0x28d   : > { %v1584_v47 = vpop.f32.mrb[2].mxu1 }
 0x28e   : > { %v2709_v17 = vadd.f32 %v1584_v47, %v633_v28  ;;  %v1586_v56 = vpop.f32.mrb[3].mxu1 }
 0x28f   : > { %v2710_v14 = vadd.f32 %v1586_v56, %v635_v1 }
 0x290   : > { %v1607_v15 = vadd.f32 %v2709_v17, %v1603_v60 }
 0x291   : > { %v1608_v16 = vadd.f32 %v2710_v14, %v1603_v60 }
 0x292   : > { %v1611_v18 = vmax.f32 %v1607_v15, 0.0 }
 0x293   : > { %v1612_v19 = vmax.f32 %v1608_v16, 0.0 }
 0x294   : > { %1628 = vrot.lane.b32.xlu1 %v1611_v18, %s2952_s11 }
 0x295   : > { %1630 = vrot.lane.b32.xlu0 %v1612_v19, %s2952_s11 }
 0x298   : > { %1617 = vrot.lane.b32.xlu1 %v1611_v18, %s2946_s28 }
 0x299   : > { %1619 = vrot.lane.b32.xlu0 %v1612_v19, %s2946_s28 }
 0x29c   : > { %1787 = vrot.lane.b32.xlu1 %v1611_v18, %s2947_s29 }
 0x29d   : > { %1789 = vrot.lane.b32.xlu0 %v1612_v19, %s2947_s29 }
 0x2a0   : > { %1875 = vrot.lane.b32.xlu1 %v1611_v18, %s2948_s30 }
 0x2a1   : > { %1877 = vrot.lane.b32.xlu0 %v1612_v19, %s2948_s30 }
 0x2a4   : > { %2043 = vrot.lane.b32.xlu1 %v1612_v19, %s2949_s8 }
 0x2a5   : > { %2041 = vrot.lane.b32.xlu0 %v1611_v18, %s2949_s8 }
 0x2a8   : > { %2131 = vrot.lane.b32.xlu1 %v1612_v19, %s2950_s9 }
 0x2a9   : > { %2129 = vrot.lane.b32.xlu0 %v1611_v18, %s2950_s9 }
 0x2ac   : > { %2217 = vrot.lane.b32.xlu1 %v1611_v18, %s2951_s10 }
 0x2ad   : > { %2219 = vrot.lane.b32.xlu0 %v1612_v19, %s2951_s10 }
 0x2b0   : > { %2305 = vrot.lane.b32.xlu1 %v1612_v19, %s2953_s12 }
 0x2b1   : > { %2303 = vrot.lane.b32.xlu0 %v1611_v18, %s2953_s12 }
 0x2b4   : > { %1597 = vperm.xlu1 %2775, %v1593_v21  }
 0x2b5   : > { %2394 = vperm.xlu0 %2774, %v2391_v44  }
 0x306   : > { %v1629_v55 = vpop.permute.xlu1 %1628 }
 0x307   : > { %v1631_v61 = vpop.permute.xlu0 %1630 }
 0x308   : > { %v1632_v20 = vsel %vm535_vm14, %v1629_v55, %v1631_v61 }
 0x309   : > { %1642 = vmatprep.subr.mxu0 %v1632_v20 }
 0x30a   : > { %v1618_v23 = vpop.permute.xlu1 %1617  ;;  %2566 = vmatpush1.msk.msra.mxu0 %vm3313_vm15, %v1629_v55 }
 0x30b   : > { %2567 = vmatmul.mubr.msk.f32.vlgmr.msra.gmra.mrb[12].mxu0 %vm1638_vm0, %v2564_v22  ;;  %v1620_v24 = vpop.permute.xlu0 %1619  ;;  %v1624_v26 = vsel %vm488_vm1, 0.0, %v1618_v23 }
 0x30c   : > { %v1621_v25 = vsel %vm488_vm1, %v1618_v23, %v1620_v24  ;;  %1780 = vmatprep.mubr.f32.mxu0 %v2944_v0  ;;  %vm3563_vm1 = vcmask 7168  }
 0x30d   : > { %2568 = vmatprep.subr.msk.mxu0 %vm3127_vm2, %v1621_v25  ;;  %vm3564_vm5 = vmmov %vm3563_vm1 }
 0x30e   : > { %v1788_v27 = vpop.permute.xlu1 %1787  ;;  %2569 = vmatpush1.msk.msra.mxu0 %vm3131_vm3, %v1624_v26 }
 0x30f   : > { %v1790_v30 = vpop.permute.xlu0 %1789  ;;  %v1794_v33 = vsel %vm737_vm6, 0.0, %v1788_v27 }
 0x310   : > { %v1791_v6 = vsel %vm737_vm6, %v1788_v27, %v1790_v30  ;;  %vm3565_vm6 = vcmask 1039360  }
 0x311   : > { %2572 = vmatprep.subr.msk.mxu0 %vm3161_vm7, %v1791_v6  ;;  %vm3566_vm9 = vmmov %vm3565_vm6 }
 0x312   : > { %v1876_v32 = vpop.permute.xlu1 %1875 }
 0x313   : > { %2570 = vmatmul.mubr.msk.f32.vlgmr.msra.gmra.mrb[12].mxu0 %vm1638_vm0, %v1627_v31  ;;  %v1878_v34 = vpop.permute.xlu0 %1877  ;;  %v1882_v39 = vsel %vm3564_vm5, 0.0, %v1876_v32 }
 0x314   : > { %2573 = vmatpush1.msk.msra.mxu0 %vm3165_vm8, %v1794_v33  ;;  %v1879_v35 = vsel %vm3563_vm1, %v1876_v32, %v1878_v34  ;;  %1866 = vmatprep.mubr.f32.mxu0 %v2944_v0 }
 0x315   : > { %2576 = vmatprep.subr.msk.mxu0 %vm3127_vm2, %v1879_v35 }
 0x316   : > { %v2044_v40 = vpop.permute.xlu1 %2043 }
 0x317   : > { %v2048_v45 = vsel %vm3565_vm6, %v2044_v40, 0.0  ;;  %v2042_v48 = vpop.permute.xlu0 %2041 }
 0x318   : > { %v2045_v53 = vsel %vm3566_vm9, %v2042_v48, %v2044_v40 }
 0x31a   : > { %v2132_v43 = vpop.permute.xlu1 %2131 }
 0x31b   : > { %2574 = vmatmul.mubr.msk.f32.vlgmr.msra.gmra.mrb[12].mxu0 %vm1638_vm0, %v2571_v38  ;;  %v2136_v54 = vsel %vm3567_vm10, %v2132_v43, 0.0  ;;  %v2130_v57 = vpop.permute.xlu0 %2129 }
 0x31c   : > { %2577 = vmatpush1.msk.msra.mxu0 %vm3131_vm3, %v1882_v39  ;;  %1954 = vmatprep.mubr.f32.mxu0 %v2944_v0  ;;  %v2133_v63 = vsel %vm3568_vm12, %v2130_v57, %v2132_v43 }
 0x31d   : > { %1968 = vmatprep.subr.mxu0 %v1612_v19 }
 0x31e   : > { %v2218_v50 = vpop.permute.xlu1 %2217 }
 0x31f   : > { %v2220_v4 = vpop.permute.xlu0 %2219 }
 0x320   : > { %v2221_v51 = vsel %vm1355_vm13, %v2218_v50, %v2220_v4 }
 0x322   : > { %v2306_v58 = vpop.permute.xlu1 %2305 }
 0x323   : > { %2578 = vmatmul.mubr.msk.f32.vlgmr.msra.gmra.mrb[12].mxu0 %vm1638_vm0, %v2575_v41  ;;  %v2310_v59 = vsel %vm1478_vm11, %v2306_v58, 0.0  ;;  %v2304_v12 = vpop.permute.xlu0 %2303 }
 0x324   : > { %1969 = vmatpush1.msra.mxu0 %v1611_v18  ;;  %2032 = vmatprep.mubr.f32.mxu0 %v2944_v0  ;;  %v2307_v8 = vsel %vm1478_vm11, %v2304_v12, %v2306_v58 }
 0x325   : > { %2582 = vmatprep.subr.msk.mxu0 %vm3161_vm7, %v2048_v45 }
 0x32b   : > { %2580 = vmatmul.mubr.msk.f32.vlgmr.msra.gmra.mrb[12].mxu0 %vm1638_vm0, %v2579_v49 }
 0x32c   : > { %2583 = vmatpush1.msk.msra.mxu0 %vm3165_vm8, %v2045_v53  ;;  %2120 = vmatprep.mubr.f32.mxu0 %v2944_v0 }
 0x32d   : > { %2586 = vmatprep.subr.msk.mxu0 %vm3127_vm2, %v2136_v54 }
 0x333   : > { %v1598_v2 = vpop.permute.xlu1 %1597  ;;  %2584 = vmatmul.mubr.msk.f32.vlgmr.msra.gmra.mrb[12].mxu0 %vm1638_vm0, %v2581_v62 }
 0x334   : > { %v1605_v5 = vadd.f32 %v3412_v36, %v1598_v2  ;;  %v1606_v7 = vadd.f32 %v3414_v13, %v1598_v2  ;;  %2587 = vmatpush1.msk.msra.mxu0 %vm3131_vm3, %v2133_v63  ;;  %2208 = vmatprep.mubr.f32.mxu0 %v2944_v0  ;;  %v2395_v10 = vpop.permute.xlu0 %2394 }
 0x335   : > { %2590 = vmatprep.subr.msk.mxu0 %vm1355_vm13, %v2220_v4 }
 0x336   : > { %v1609_v9 = vmax.f32 %v1605_v5, 0.0  ;;  %v1610_v29 = vmax.f32 %v1606_v7, 0.0 }
 0x338   : > { %1613 = vst [vmem:[%s3022_s18 + $0x40] sm:$0xff] %v1609_v9  ;;  %1614 = vst [vmem:[%s3022_s18 + $0x48] sm:$0xff] %v1610_v29 }
 0x33b   : > { %2588 = vmatmul.mubr.msk.f32.vlgmr.msra.gmra.mrb[12].mxu0 %vm1638_vm0, %v2585_v37 }
 0x33c   : > { %2231 = vmatpush1.msra.mxu0 %v2221_v51  ;;  %2294 = vmatprep.mubr.f32.mxu0 %v2944_v0 }
 0x33d   : > { %2593 = vmatprep.subr.msk.mxu0 %vm3161_vm7, %v2310_v59 }
 0x343   : > { %2591 = vmatmul.mubr.msk.f32.vlgmr.msra.gmra.mrb[12].mxu0 %vm1638_vm0, %v2589_v3 }
 0x344   : > { %2594 = vmatpush1.msk.msra.mxu0 %vm3165_vm8, %v2307_v8  ;;  %2382 = vmatprep.mubr.f32.mxu0 %v2944_v0 }
 0x34b   : > { %2595 = vmatmul.mubr.msk.f32.vlgmr.msra.gmra.mrb[12].mxu0 %vm1638_vm0, %v2592_v42 }
 0x41e   : > { %v2384_v11 = vpop.f32.mrb[12].mxu0 }
 0x41f   : > { %v2397_v28 = vadd.f32 %v2395_v10, %v2384_v11  ;;  %v2386_v36 = vpop.f32.mrb[13].mxu0 }
 0x420   : > { %v2398_v52 = vadd.f32 %v2395_v10, %v2386_v36 }
 0x421   : > { %v2399_v1 = vmax.f32 %v2397_v28, 0.0 }
 0x422   : > { %v2400_v13 = vmax.f32 %v2398_v52, 0.0 }
 0x423   : > { %2401 = vst [vmem:[%s3022_s18 + $0x50] sm:$0xff] %v2399_v1 }
 0x424   : > { %2402 = vst [vmem:[%s3022_s18 + $0x58] sm:$0xff] %v2400_v13 }
 0x425 PF: > { %s17_s24 = sadd.s32 1, %s2942_s24  }
 0x426   : > { %p14_p4 = scmp.ge.s32.totalorder %s17_s24, 4  }
 0x428   :  { %16 = sbr.rel (!%p14_p4) target bundleno = 1 (0x1), region = 94 }

</bundles_post_ra>
